<compile_context>
chip_gen: v7x
topology: tpu7x:2x2x1
jax: 0.10.0
libtpu: 0.0.40
codegen_flags: <defaults>
</compile_context>

<pallas_src>
import numpy as np
import jax
import jax.numpy as jnp
from jax import lax
from jax.experimental import pallas as pl
from jax.experimental.pallas import tpu as pltpu


def _sigmoid(v):
    # tanh form: one EUP transcendental + 2 cheap VPU ops per application
    # (the 64-iteration hot path is EUP-bound; avoids exp + full-precision div).
    return 0.5 * jnp.tanh(0.5 * v) + 0.5


def _pick_compute_dtype(x_dtype):
    """bf16 math only where VPU/EUP support it (v6e/v7x); f32 elsewhere."""
    if x_dtype == jnp.bfloat16:
        try:
            kind = jax.devices()[0].device_kind.lower()
        except Exception:
            kind = ""
        if ("v6" in kind) or ("v7" in kind):
            return jnp.bfloat16
    return jnp.float32


def _make_static_kernel(n_iters, chunk_rows, n_chunks, compute_dtype):
    """Counter known at trace time -> static, fully unrolled iteration loop."""

    def apply_chunk(v):
        v = v.astype(compute_dtype)
        for _ in range(n_iters):          # static trip count -> full unroll
            v = _sigmoid(v)
        return v

    def kernel(x_ref, o_ref):
        if n_chunks == 1:
            o_ref[...] = apply_chunk(x_ref[...]).astype(o_ref.dtype)
        else:
            def do_chunk(ci, carry):
                r0 = pl.multiple_of(ci * chunk_rows, chunk_rows)
                v = apply_chunk(x_ref[pl.ds(r0, chunk_rows), :])
                o_ref[pl.ds(r0, chunk_rows), :] = v.astype(o_ref.dtype)
                return carry
            # keep this loop rolled: each chunk body is already ~4k instrs
            lax.fori_loop(0, n_chunks, do_chunk, 0)

    return kernel


def _make_dynamic_kernel(chunk_rows, n_chunks, compute_dtype):
    """Counter is a traced runtime value -> read it from SMEM (scalar prefetch)."""

    def kernel(counter_ref, x_ref, o_ref):
        n_iters = jnp.maximum(jnp.int32(1), jnp.int32(64) - counter_ref[0])
        n4 = n_iters // 4
        rem = n_iters - 4 * n4

        def apply_chunk(v):
            v = v.astype(compute_dtype)

            # 4x-unrolled main loop cuts scalar compare/branch/carry overhead.
            def body4(_, u):
                u = _sigmoid(u)
                u = _sigmoid(u)
                u = _sigmoid(u)
                u = _sigmoid(u)
                return u

            v = lax.fori_loop(0, n4, body4, v)
            v = lax.fori_loop(0, rem, lambda _, u: _sigmoid(u), v)
            return v

        if n_chunks == 1:
            o_ref[...] = apply_chunk(x_ref[...]).astype(o_ref.dtype)
        else:
            def do_chunk(ci, carry):
                r0 = pl.multiple_of(ci * chunk_rows, chunk_rows)
                v = apply_chunk(x_ref[pl.ds(r0, chunk_rows), :])
                o_ref[pl.ds(r0, chunk_rows), :] = v.astype(o_ref.dtype)
                return carry
            lax.fori_loop(0, n_chunks, do_chunk, 0)

    return kernel


def _choose_tiling(total):
    """Returns (W, rows, tm, chunk_rows, n_chunks, needs_pad)."""
    # Lane width: largest W in {512, 256, 128} dividing total -> no pad copy.
    W = None
    for cand in (512, 256, 128):
        if total % cand == 0:
            W = cand
            break
    needs_pad = W is None
    if needs_pad:
        W = 512 if total >= 8 * 512 else 128

    # W-aligned row count only; the grid handles the ragged last block.
    rows = -(-total // W)

    # chunk ~ 64 KiB (16 f32 vregs) so the unrolled 64-iter carry stays in vregs.
    chunk_rows = max(8, (64 * 1024) // (W * 4))

    # block target ~ 2 MiB: amortizes ~0.35 us per-grid-step overhead on the
    # memory-bound path; 2 MiB x 2 buffers x (in+out) = 8 MiB VMEM, inside the
    # scoped defaults on v5e/v6e/v7x.
    blk_rows_target = max(
        chunk_rows,
        ((2 * 1024 * 1024) // (W * 4)) // chunk_rows * chunk_rows)

    if rows < 16:
        # Single block covering the whole (small) array.  Block row extent ==
        # full array dim, which satisfies the (8,128) tiling rule even when
        # rows % 8 != 0.
        tm = rows
        chunk_rows = rows
    else:
        # Cap tm to ~half the rows (multiple of 8, strictly < rows) so the grid
        # always has >= 2 steps -> both v7x TensorCores get work.
        cap = ((-(-rows // 2)) + 7) // 8 * 8
        tm = min(blk_rows_target, cap)
        if tm <= chunk_rows:
            chunk_rows = tm
        else:
            tm = (tm // chunk_rows) * chunk_rows

    n_chunks = tm // chunk_rows
    return W, rows, tm, chunk_rows, n_chunks, needs_pad


def model_3_forward(x, counter):
    """x: any-shape float array (e.g. NCHW); counter: python int or int32 scalar."""
    orig_shape = x.shape
    dtype = x.dtype
    total = int(np.prod(orig_shape))
    itemsize = jnp.dtype(dtype).itemsize

    W, rows, tm, chunk_rows, n_chunks, _needs_pad = _choose_tiling(total)
    grid = (pl.cdiv(rows, tm),)

    padded_total = rows * W
    x_flat = jnp.reshape(x, (-1,))
    if padded_total != total:
        # Only when total isn't a multiple of 128: tail-pad to W alignment.
        x_flat = jnp.concatenate(
            [x_flat, jnp.zeros((padded_total - total,), dtype=dtype)])
    x2d = x_flat.reshape(rows, W)

    compute_dtype = _pick_compute_dtype(dtype)
    out_shape = jax.ShapeDtypeStruct((rows, W), dtype)
    cparams = pltpu.CompilerParams(dimension_semantics=("parallel",))

    static_counter = isinstance(counter, (int, np.integer))
    n_iters_est = max(1, 64 - int(counter)) if static_counter else 64
    cost = pl.CostEstimate(
        flops=3 * padded_total * n_iters_est,
        transcendentals=padded_total * n_iters_est,
        bytes_accessed=2 * padded_total * itemsize,
    )

    if static_counter:
        # Static specialization: do-while runs max(1, 64 - counter) times.
        n_iters = max(1, 64 - int(counter))
        out2d = pl.pallas_call(
            _make_static_kernel(n_iters, chunk_rows, n_chunks, compute_dtype),
            out_shape=out_shape,
            grid=grid,
            in_specs=[pl.BlockSpec((tm, W), lambda i: (i, 0))],
            out_specs=pl.BlockSpec((tm, W), lambda i: (i, 0)),
            compiler_params=cparams,
            cost_estimate=cost,
        )(x2d)
    else:
        # Dynamic (traced) counter fallback: counter lives in SMEM.
        counter_arr = jnp.asarray(counter, dtype=jnp.int32).reshape((1,))
        out2d = pl.pallas_call(
            _make_dynamic_kernel(chunk_rows, n_chunks, compute_dtype),
            out_shape=out_shape,
            grid_spec=pltpu.PrefetchScalarGridSpec(
                num_scalar_prefetch=1,
                grid=grid,
                in_specs=[pl.BlockSpec((tm, W), lambda i, c: (i, 0))],
                out_specs=pl.BlockSpec((tm, W), lambda i, c: (i, 0)),
            ),
            compiler_params=cparams,
            cost_estimate=cost,
        )(counter_arr, x2d)

    out_flat = out2d.reshape((-1,))
    if padded_total != total:
        out_flat = out_flat[:total]
    return out_flat.reshape(orig_shape)


def _reference(x, counter):
    # pure-JAX reference of the PyTorch while loop
    n = max(1, 64 - int(counter))
    y = x.astype(jnp.float32)
    for _ in range(n):
        y = 1.0 / (1.0 + jnp.exp(-y))
    return y.astype(x.dtype)


if __name__ == "__main__":
    key = jax.random.PRNGKey(0)
    x = jax.random.normal(key, (2, 4, 16, 16), dtype=jnp.float32)

    # counter = 0 -> 64 sigmoid applications (static-counter fast path)
    out = jax.block_until_ready(model_3_forward(x, 0))
    ref = _reference(x, 0)
    assert out.shape == x.shape and out.dtype == x.dtype
    assert jnp.allclose(out, ref, atol=1e-5, rtol=1e-5)

    # counter already >= 64 -> exactly one sigmoid (memory-bound path)
    out2 = jax.block_until_ready(model_3_forward(x, 100))
    ref2 = _reference(x, 100)
    assert jnp.allclose(out2, ref2, atol=1e-5, rtol=1e-5)

    # traced/array counter -> dynamic SMEM scalar-prefetch fallback (4x unroll)
    out3 = jax.block_until_ready(model_3_forward(x, jnp.int32(60)))
    ref3 = _reference(x, 60)
    assert jnp.allclose(out3, ref3, atol=1e-5, rtol=1e-5)

    # odd total (not a multiple of 128): tail-pad path + multi-step ragged grid
    k2 = jax.random.PRNGKey(1)
    x_odd = jax.random.normal(k2, (3, 4, 37, 29), dtype=jnp.float32)
    out4 = jax.block_until_ready(model_3_forward(x_odd, 0))
    ref4 = _reference(x_odd, 0)
    assert jnp.allclose(out4, ref4, atol=1e-5, rtol=1e-5)

    # total divisible by 256 but not 512: W=256, full-extent (rows<16) block
    k3 = jax.random.PRNGKey(2)
    x_256 = jax.random.normal(k3, (2, 4, 12, 24), dtype=jnp.float32)
    out5 = jax.block_until_ready(model_3_forward(x_256, 62))
    ref5 = _reference(x_256, 62)
    assert jnp.allclose(out5, ref5, atol=1e-5, rtol=1e-5)

    print("KERNEL_OK")
</pallas_src>

<mosaic_0001>
module attributes {stable_mosaic.version = 11 : i64} {
  func.func @kernel(%arg0: i32, %arg1: memref<4x512xf32, #tpu.memory_space<vmem>>, %arg2: memref<4x512xf32, #tpu.memory_space<vmem>>) attributes {dimension_semantics = [#tpu.dimension_semantics<parallel>], iteration_bounds = array<i64: 1>, scalar_prefetch = 0 : i64, scratch_operands = 0 : i64, tpu.core_type = #tpu.core_type<tc>, window_params = [{transform_indices = @transform_0, window_bounds = array<i64: 4, 512>}, {transform_indices = @transform_1, window_bounds = array<i64: 4, 512>}]} {
    %c0 = arith.constant 0 : index
    %c0_0 = arith.constant 0 : index
    %0 = vector.load %arg1[%c0, %c0_0] : memref<4x512xf32, #tpu.memory_space<vmem>>, vector<4x512xf32>
    %cst = arith.constant 5.000000e-01 : f32
    %1 = vector.broadcast %cst : f32 to vector<4x512xf32>
    %2 = arith.mulf %1, %0 : vector<4x512xf32>
    %3 = math.tanh %2 : vector<4x512xf32>
    %cst_1 = arith.constant 5.000000e-01 : f32
    %4 = vector.broadcast %cst_1 : f32 to vector<4x512xf32>
    %5 = arith.mulf %4, %3 : vector<4x512xf32>
    %cst_2 = arith.constant 5.000000e-01 : f32
    %6 = vector.broadcast %cst_2 : f32 to vector<4x512xf32>
    %7 = arith.addf %5, %6 : vector<4x512xf32>
    %cst_3 = arith.constant 5.000000e-01 : f32
    %8 = vector.broadcast %cst_3 : f32 to vector<4x512xf32>
    %9 = arith.mulf %8, %7 : vector<4x512xf32>
    %10 = math.tanh %9 : vector<4x512xf32>
    %cst_4 = arith.constant 5.000000e-01 : f32
    %11 = vector.broadcast %cst_4 : f32 to vector<4x512xf32>
    %12 = arith.mulf %11, %10 : vector<4x512xf32>
    %cst_5 = arith.constant 5.000000e-01 : f32
    %13 = vector.broadcast %cst_5 : f32 to vector<4x512xf32>
    %14 = arith.addf %12, %13 : vector<4x512xf32>
    %cst_6 = arith.constant 5.000000e-01 : f32
    %15 = vector.broadcast %cst_6 : f32 to vector<4x512xf32>
    %16 = arith.mulf %15, %14 : vector<4x512xf32>
    %17 = math.tanh %16 : vector<4x512xf32>
    %cst_7 = arith.constant 5.000000e-01 : f32
    %18 = vector.broadcast %cst_7 : f32 to vector<4x512xf32>
    %19 = arith.mulf %18, %17 : vector<4x512xf32>
    %cst_8 = arith.constant 5.000000e-01 : f32
    %20 = vector.broadcast %cst_8 : f32 to vector<4x512xf32>
    %21 = arith.addf %19, %20 : vector<4x512xf32>
    %cst_9 = arith.constant 5.000000e-01 : f32
    %22 = vector.broadcast %cst_9 : f32 to vector<4x512xf32>
    %23 = arith.mulf %22, %21 : vector<4x512xf32>
    %24 = math.tanh %23 : vector<4x512xf32>
    %cst_10 = arith.constant 5.000000e-01 : f32
    %25 = vector.broadcast %cst_10 : f32 to vector<4x512xf32>
    %26 = arith.mulf %25, %24 : vector<4x512xf32>
    %cst_11 = arith.constant 5.000000e-01 : f32
    %27 = vector.broadcast %cst_11 : f32 to vector<4x512xf32>
    %28 = arith.addf %26, %27 : vector<4x512xf32>
    %cst_12 = arith.constant 5.000000e-01 : f32
    %29 = vector.broadcast %cst_12 : f32 to vector<4x512xf32>
    %30 = arith.mulf %29, %28 : vector<4x512xf32>
    %31 = math.tanh %30 : vector<4x512xf32>
    %cst_13 = arith.constant 5.000000e-01 : f32
    %32 = vector.broadcast %cst_13 : f32 to vector<4x512xf32>
    %33 = arith.mulf %32, %31 : vector<4x512xf32>
    %cst_14 = arith.constant 5.000000e-01 : f32
    %34 = vector.broadcast %cst_14 : f32 to vector<4x512xf32>
    %35 = arith.addf %33, %34 : vector<4x512xf32>
    %cst_15 = arith.constant 5.000000e-01 : f32
    %36 = vector.broadcast %cst_15 : f32 to vector<4x512xf32>
    %37 = arith.mulf %36, %35 : vector<4x512xf32>
    %38 = math.tanh %37 : vector<4x512xf32>
    %cst_16 = arith.constant 5.000000e-01 : f32
    %39 = vector.broadcast %cst_16 : f32 to vector<4x512xf32>
    %40 = arith.mulf %39, %38 : vector<4x512xf32>
    %cst_17 = arith.constant 5.000000e-01 : f32
    %41 = vector.broadcast %cst_17 : f32 to vector<4x512xf32>
    %42 = arith.addf %40, %41 : vector<4x512xf32>
    %cst_18 = arith.constant 5.000000e-01 : f32
    %43 = vector.broadcast %cst_18 : f32 to vector<4x512xf32>
    %44 = arith.mulf %43, %42 : vector<4x512xf32>
    %45 = math.tanh %44 : vector<4x512xf32>
    %cst_19 = arith.constant 5.000000e-01 : f32
    %46 = vector.broadcast %cst_19 : f32 to vector<4x512xf32>
    %47 = arith.mulf %46, %45 : vector<4x512xf32>
    %cst_20 = arith.constant 5.000000e-01 : f32
    %48 = vector.broadcast %cst_20 : f32 to vector<4x512xf32>
    %49 = arith.addf %47, %48 : vector<4x512xf32>
    %cst_21 = arith.constant 5.000000e-01 : f32
    %50 = vector.broadcast %cst_21 : f32 to vector<4x512xf32>
    %51 = arith.mulf %50, %49 : vector<4x512xf32>
    %52 = math.tanh %51 : vector<4x512xf32>
    %cst_22 = arith.constant 5.000000e-01 : f32
    %53 = vector.broadcast %cst_22 : f32 to vector<4x512xf32>
    %54 = arith.mulf %53, %52 : vector<4x512xf32>
    %cst_23 = arith.constant 5.000000e-01 : f32
    %55 = vector.broadcast %cst_23 : f32 to vector<4x512xf32>
    %56 = arith.addf %54, %55 : vector<4x512xf32>
    %cst_24 = arith.constant 5.000000e-01 : f32
    %57 = vector.broadcast %cst_24 : f32 to vector<4x512xf32>
    %58 = arith.mulf %57, %56 : vector<4x512xf32>
    %59 = math.tanh %58 : vector<4x512xf32>
    %cst_25 = arith.constant 5.000000e-01 : f32
    %60 = vector.broadcast %cst_25 : f32 to vector<4x512xf32>
    %61 = arith.mulf %60, %59 : vector<4x512xf32>
    %cst_26 = arith.constant 5.000000e-01 : f32
    %62 = vector.broadcast %cst_26 : f32 to vector<4x512xf32>
    %63 = arith.addf %61, %62 : vector<4x512xf32>
    %cst_27 = arith.constant 5.000000e-01 : f32
    %64 = vector.broadcast %cst_27 : f32 to vector<4x512xf32>
    %65 = arith.mulf %64, %63 : vector<4x512xf32>
    %66 = math.tanh %65 : vector<4x512xf32>
    %cst_28 = arith.constant 5.000000e-01 : f32
    %67 = vector.broadcast %cst_28 : f32 to vector<4x512xf32>
    %68 = arith.mulf %67, %66 : vector<4x512xf32>
    %cst_29 = arith.constant 5.000000e-01 : f32
    %69 = vector.broadcast %cst_29 : f32 to vector<4x512xf32>
    %70 = arith.addf %68, %69 : vector<4x512xf32>
    %cst_30 = arith.constant 5.000000e-01 : f32
    %71 = vector.broadcast %cst_30 : f32 to vector<4x512xf32>
    %72 = arith.mulf %71, %70 : vector<4x512xf32>
    %73 = math.tanh %72 : vector<4x512xf32>
    %cst_31 = arith.constant 5.000000e-01 : f32
    %74 = vector.broadcast %cst_31 : f32 to vector<4x512xf32>
    %75 = arith.mulf %74, %73 : vector<4x512xf32>
    %cst_32 = arith.constant 5.000000e-01 : f32
    %76 = vector.broadcast %cst_32 : f32 to vector<4x512xf32>
    %77 = arith.addf %75, %76 : vector<4x512xf32>
    %cst_33 = arith.constant 5.000000e-01 : f32
    %78 = vector.broadcast %cst_33 : f32 to vector<4x512xf32>
    %79 = arith.mulf %78, %77 : vector<4x512xf32>
    %80 = math.tanh %79 : vector<4x512xf32>
    %cst_34 = arith.constant 5.000000e-01 : f32
    %81 = vector.broadcast %cst_34 : f32 to vector<4x512xf32>
    %82 = arith.mulf %81, %80 : vector<4x512xf32>
    %cst_35 = arith.constant 5.000000e-01 : f32
    %83 = vector.broadcast %cst_35 : f32 to vector<4x512xf32>
    %84 = arith.addf %82, %83 : vector<4x512xf32>
    %cst_36 = arith.constant 5.000000e-01 : f32
    %85 = vector.broadcast %cst_36 : f32 to vector<4x512xf32>
    %86 = arith.mulf %85, %84 : vector<4x512xf32>
    %87 = math.tanh %86 : vector<4x512xf32>
    %cst_37 = arith.constant 5.000000e-01 : f32
    %88 = vector.broadcast %cst_37 : f32 to vector<4x512xf32>
    %89 = arith.mulf %88, %87 : vector<4x512xf32>
    %cst_38 = arith.constant 5.000000e-01 : f32
    %90 = vector.broadcast %cst_38 : f32 to vector<4x512xf32>
    %91 = arith.addf %89, %90 : vector<4x512xf32>
    %cst_39 = arith.constant 5.000000e-01 : f32
    %92 = vector.broadcast %cst_39 : f32 to vector<4x512xf32>
    %93 = arith.mulf %92, %91 : vector<4x512xf32>
    %94 = math.tanh %93 : vector<4x512xf32>
    %cst_40 = arith.constant 5.000000e-01 : f32
    %95 = vector.broadcast %cst_40 : f32 to vector<4x512xf32>
    %96 = arith.mulf %95, %94 : vector<4x512xf32>
    %cst_41 = arith.constant 5.000000e-01 : f32
    %97 = vector.broadcast %cst_41 : f32 to vector<4x512xf32>
    %98 = arith.addf %96, %97 : vector<4x512xf32>
    %cst_42 = arith.constant 5.000000e-01 : f32
    %99 = vector.broadcast %cst_42 : f32 to vector<4x512xf32>
    %100 = arith.mulf %99, %98 : vector<4x512xf32>
    %101 = math.tanh %100 : vector<4x512xf32>
    %cst_43 = arith.constant 5.000000e-01 : f32
    %102 = vector.broadcast %cst_43 : f32 to vector<4x512xf32>
    %103 = arith.mulf %102, %101 : vector<4x512xf32>
    %cst_44 = arith.constant 5.000000e-01 : f32
    %104 = vector.broadcast %cst_44 : f32 to vector<4x512xf32>
    %105 = arith.addf %103, %104 : vector<4x512xf32>
    %cst_45 = arith.constant 5.000000e-01 : f32
    %106 = vector.broadcast %cst_45 : f32 to vector<4x512xf32>
    %107 = arith.mulf %106, %105 : vector<4x512xf32>
    %108 = math.tanh %107 : vector<4x512xf32>
    %cst_46 = arith.constant 5.000000e-01 : f32
    %109 = vector.broadcast %cst_46 : f32 to vector<4x512xf32>
    %110 = arith.mulf %109, %108 : vector<4x512xf32>
    %cst_47 = arith.constant 5.000000e-01 : f32
    %111 = vector.broadcast %cst_47 : f32 to vector<4x512xf32>
    %112 = arith.addf %110, %111 : vector<4x512xf32>
    %cst_48 = arith.constant 5.000000e-01 : f32
    %113 = vector.broadcast %cst_48 : f32 to vector<4x512xf32>
    %114 = arith.mulf %113, %112 : vector<4x512xf32>
    %115 = math.tanh %114 : vector<4x512xf32>
    %cst_49 = arith.constant 5.000000e-01 : f32
    %116 = vector.broadcast %cst_49 : f32 to vector<4x512xf32>
    %117 = arith.mulf %116, %115 : vector<4x512xf32>
    %cst_50 = arith.constant 5.000000e-01 : f32
    %118 = vector.broadcast %cst_50 : f32 to vector<4x512xf32>
    %119 = arith.addf %117, %118 : vector<4x512xf32>
    %cst_51 = arith.constant 5.000000e-01 : f32
    %120 = vector.broadcast %cst_51 : f32 to vector<4x512xf32>
    %121 = arith.mulf %120, %119 : vector<4x512xf32>
    %122 = math.tanh %121 : vector<4x512xf32>
    %cst_52 = arith.constant 5.000000e-01 : f32
    %123 = vector.broadcast %cst_52 : f32 to vector<4x512xf32>
    %124 = arith.mulf %123, %122 : vector<4x512xf32>
    %cst_53 = arith.constant 5.000000e-01 : f32
    %125 = vector.broadcast %cst_53 : f32 to vector<4x512xf32>
    %126 = arith.addf %124, %125 : vector<4x512xf32>
    %cst_54 = arith.constant 5.000000e-01 : f32
    %127 = vector.broadcast %cst_54 : f32 to vector<4x512xf32>
    %128 = arith.mulf %127, %126 : vector<4x512xf32>
    %129 = math.tanh %128 : vector<4x512xf32>
    %cst_55 = arith.constant 5.000000e-01 : f32
    %130 = vector.broadcast %cst_55 : f32 to vector<4x512xf32>
    %131 = arith.mulf %130, %129 : vector<4x512xf32>
    %cst_56 = arith.constant 5.000000e-01 : f32
    %132 = vector.broadcast %cst_56 : f32 to vector<4x512xf32>
    %133 = arith.addf %131, %132 : vector<4x512xf32>
    %cst_57 = arith.constant 5.000000e-01 : f32
    %134 = vector.broadcast %cst_57 : f32 to vector<4x512xf32>
    %135 = arith.mulf %134, %133 : vector<4x512xf32>
    %136 = math.tanh %135 : vector<4x512xf32>
    %cst_58 = arith.constant 5.000000e-01 : f32
    %137 = vector.broadcast %cst_58 : f32 to vector<4x512xf32>
    %138 = arith.mulf %137, %136 : vector<4x512xf32>
    %cst_59 = arith.constant 5.000000e-01 : f32
    %139 = vector.broadcast %cst_59 : f32 to vector<4x512xf32>
    %140 = arith.addf %138, %139 : vector<4x512xf32>
    %cst_60 = arith.constant 5.000000e-01 : f32
    %141 = vector.broadcast %cst_60 : f32 to vector<4x512xf32>
    %142 = arith.mulf %141, %140 : vector<4x512xf32>
    %143 = math.tanh %142 : vector<4x512xf32>
    %cst_61 = arith.constant 5.000000e-01 : f32
    %144 = vector.broadcast %cst_61 : f32 to vector<4x512xf32>
    %145 = arith.mulf %144, %143 : vector<4x512xf32>
    %cst_62 = arith.constant 5.000000e-01 : f32
    %146 = vector.broadcast %cst_62 : f32 to vector<4x512xf32>
    %147 = arith.addf %145, %146 : vector<4x512xf32>
    %cst_63 = arith.constant 5.000000e-01 : f32
    %148 = vector.broadcast %cst_63 : f32 to vector<4x512xf32>
    %149 = arith.mulf %148, %147 : vector<4x512xf32>
    %150 = math.tanh %149 : vector<4x512xf32>
    %cst_64 = arith.constant 5.000000e-01 : f32
    %151 = vector.broadcast %cst_64 : f32 to vector<4x512xf32>
    %152 = arith.mulf %151, %150 : vector<4x512xf32>
    %cst_65 = arith.constant 5.000000e-01 : f32
    %153 = vector.broadcast %cst_65 : f32 to vector<4x512xf32>
    %154 = arith.addf %152, %153 : vector<4x512xf32>
    %cst_66 = arith.constant 5.000000e-01 : f32
    %155 = vector.broadcast %cst_66 : f32 to vector<4x512xf32>
    %156 = arith.mulf %155, %154 : vector<4x512xf32>
    %157 = math.tanh %156 : vector<4x512xf32>
    %cst_67 = arith.constant 5.000000e-01 : f32
    %158 = vector.broadcast %cst_67 : f32 to vector<4x512xf32>
    %159 = arith.mulf %158, %157 : vector<4x512xf32>
    %cst_68 = arith.constant 5.000000e-01 : f32
    %160 = vector.broadcast %cst_68 : f32 to vector<4x512xf32>
    %161 = arith.addf %159, %160 : vector<4x512xf32>
    %cst_69 = arith.constant 5.000000e-01 : f32
    %162 = vector.broadcast %cst_69 : f32 to vector<4x512xf32>
    %163 = arith.mulf %162, %161 : vector<4x512xf32>
    %164 = math.tanh %163 : vector<4x512xf32>
    %cst_70 = arith.constant 5.000000e-01 : f32
    %165 = vector.broadcast %cst_70 : f32 to vector<4x512xf32>
    %166 = arith.mulf %165, %164 : vector<4x512xf32>
    %cst_71 = arith.constant 5.000000e-01 : f32
    %167 = vector.broadcast %cst_71 : f32 to vector<4x512xf32>
    %168 = arith.addf %166, %167 : vector<4x512xf32>
    %cst_72 = arith.constant 5.000000e-01 : f32
    %169 = vector.broadcast %cst_72 : f32 to vector<4x512xf32>
    %170 = arith.mulf %169, %168 : vector<4x512xf32>
    %171 = math.tanh %170 : vector<4x512xf32>
    %cst_73 = arith.constant 5.000000e-01 : f32
    %172 = vector.broadcast %cst_73 : f32 to vector<4x512xf32>
    %173 = arith.mulf %172, %171 : vector<4x512xf32>
    %cst_74 = arith.constant 5.000000e-01 : f32
    %174 = vector.broadcast %cst_74 : f32 to vector<4x512xf32>
    %175 = arith.addf %173, %174 : vector<4x512xf32>
    %cst_75 = arith.constant 5.000000e-01 : f32
    %176 = vector.broadcast %cst_75 : f32 to vector<4x512xf32>
    %177 = arith.mulf %176, %175 : vector<4x512xf32>
    %178 = math.tanh %177 : vector<4x512xf32>
    %cst_76 = arith.constant 5.000000e-01 : f32
    %179 = vector.broadcast %cst_76 : f32 to vector<4x512xf32>
    %180 = arith.mulf %179, %178 : vector<4x512xf32>
    %cst_77 = arith.constant 5.000000e-01 : f32
    %181 = vector.broadcast %cst_77 : f32 to vector<4x512xf32>
    %182 = arith.addf %180, %181 : vector<4x512xf32>
    %cst_78 = arith.constant 5.000000e-01 : f32
    %183 = vector.broadcast %cst_78 : f32 to vector<4x512xf32>
    %184 = arith.mulf %183, %182 : vector<4x512xf32>
    %185 = math.tanh %184 : vector<4x512xf32>
    %cst_79 = arith.constant 5.000000e-01 : f32
    %186 = vector.broadcast %cst_79 : f32 to vector<4x512xf32>
    %187 = arith.mulf %186, %185 : vector<4x512xf32>
    %cst_80 = arith.constant 5.000000e-01 : f32
    %188 = vector.broadcast %cst_80 : f32 to vector<4x512xf32>
    %189 = arith.addf %187, %188 : vector<4x512xf32>
    %cst_81 = arith.constant 5.000000e-01 : f32
    %190 = vector.broadcast %cst_81 : f32 to vector<4x512xf32>
    %191 = arith.mulf %190, %189 : vector<4x512xf32>
    %192 = math.tanh %191 : vector<4x512xf32>
    %cst_82 = arith.constant 5.000000e-01 : f32
    %193 = vector.broadcast %cst_82 : f32 to vector<4x512xf32>
    %194 = arith.mulf %193, %192 : vector<4x512xf32>
    %cst_83 = arith.constant 5.000000e-01 : f32
    %195 = vector.broadcast %cst_83 : f32 to vector<4x512xf32>
    %196 = arith.addf %194, %195 : vector<4x512xf32>
    %cst_84 = arith.constant 5.000000e-01 : f32
    %197 = vector.broadcast %cst_84 : f32 to vector<4x512xf32>
    %198 = arith.mulf %197, %196 : vector<4x512xf32>
    %199 = math.tanh %198 : vector<4x512xf32>
    %cst_85 = arith.constant 5.000000e-01 : f32
    %200 = vector.broadcast %cst_85 : f32 to vector<4x512xf32>
    %201 = arith.mulf %200, %199 : vector<4x512xf32>
    %cst_86 = arith.constant 5.000000e-01 : f32
    %202 = vector.broadcast %cst_86 : f32 to vector<4x512xf32>
    %203 = arith.addf %201, %202 : vector<4x512xf32>
    %cst_87 = arith.constant 5.000000e-01 : f32
    %204 = vector.broadcast %cst_87 : f32 to vector<4x512xf32>
    %205 = arith.mulf %204, %203 : vector<4x512xf32>
    %206 = math.tanh %205 : vector<4x512xf32>
    %cst_88 = arith.constant 5.000000e-01 : f32
    %207 = vector.broadcast %cst_88 : f32 to vector<4x512xf32>
    %208 = arith.mulf %207, %206 : vector<4x512xf32>
    %cst_89 = arith.constant 5.000000e-01 : f32
    %209 = vector.broadcast %cst_89 : f32 to vector<4x512xf32>
    %210 = arith.addf %208, %209 : vector<4x512xf32>
    %cst_90 = arith.constant 5.000000e-01 : f32
    %211 = vector.broadcast %cst_90 : f32 to vector<4x512xf32>
    %212 = arith.mulf %211, %210 : vector<4x512xf32>
    %213 = math.tanh %212 : vector<4x512xf32>
    %cst_91 = arith.constant 5.000000e-01 : f32
    %214 = vector.broadcast %cst_91 : f32 to vector<4x512xf32>
    %215 = arith.mulf %214, %213 : vector<4x512xf32>
    %cst_92 = arith.constant 5.000000e-01 : f32
    %216 = vector.broadcast %cst_92 : f32 to vector<4x512xf32>
    %217 = arith.addf %215, %216 : vector<4x512xf32>
    %cst_93 = arith.constant 5.000000e-01 : f32
    %218 = vector.broadcast %cst_93 : f32 to vector<4x512xf32>
    %219 = arith.mulf %218, %217 : vector<4x512xf32>
    %220 = math.tanh %219 : vector<4x512xf32>
    %cst_94 = arith.constant 5.000000e-01 : f32
    %221 = vector.broadcast %cst_94 : f32 to vector<4x512xf32>
    %222 = arith.mulf %221, %220 : vector<4x512xf32>
    %cst_95 = arith.constant 5.000000e-01 : f32
    %223 = vector.broadcast %cst_95 : f32 to vector<4x512xf32>
    %224 = arith.addf %222, %223 : vector<4x512xf32>
    %cst_96 = arith.constant 5.000000e-01 : f32
    %225 = vector.broadcast %cst_96 : f32 to vector<4x512xf32>
    %226 = arith.mulf %225, %224 : vector<4x512xf32>
    %227 = math.tanh %226 : vector<4x512xf32>
    %cst_97 = arith.constant 5.000000e-01 : f32
    %228 = vector.broadcast %cst_97 : f32 to vector<4x512xf32>
    %229 = arith.mulf %228, %227 : vector<4x512xf32>
    %cst_98 = arith.constant 5.000000e-01 : f32
    %230 = vector.broadcast %cst_98 : f32 to vector<4x512xf32>
    %231 = arith.addf %229, %230 : vector<4x512xf32>
    %cst_99 = arith.constant 5.000000e-01 : f32
    %232 = vector.broadcast %cst_99 : f32 to vector<4x512xf32>
    %233 = arith.mulf %232, %231 : vector<4x512xf32>
    %234 = math.tanh %233 : vector<4x512xf32>
    %cst_100 = arith.constant 5.000000e-01 : f32
    %235 = vector.broadcast %cst_100 : f32 to vector<4x512xf32>
    %236 = arith.mulf %235, %234 : vector<4x512xf32>
    %cst_101 = arith.constant 5.000000e-01 : f32
    %237 = vector.broadcast %cst_101 : f32 to vector<4x512xf32>
    %238 = arith.addf %236, %237 : vector<4x512xf32>
    %cst_102 = arith.constant 5.000000e-01 : f32
    %239 = vector.broadcast %cst_102 : f32 to vector<4x512xf32>
    %240 = arith.mulf %239, %238 : vector<4x512xf32>
    %241 = math.tanh %240 : vector<4x512xf32>
    %cst_103 = arith.constant 5.000000e-01 : f32
    %242 = vector.broadcast %cst_103 : f32 to vector<4x512xf32>
    %243 = arith.mulf %242, %241 : vector<4x512xf32>
    %cst_104 = arith.constant 5.000000e-01 : f32
    %244 = vector.broadcast %cst_104 : f32 to vector<4x512xf32>
    %245 = arith.addf %243, %244 : vector<4x512xf32>
    %cst_105 = arith.constant 5.000000e-01 : f32
    %246 = vector.broadcast %cst_105 : f32 to vector<4x512xf32>
    %247 = arith.mulf %246, %245 : vector<4x512xf32>
    %248 = math.tanh %247 : vector<4x512xf32>
    %cst_106 = arith.constant 5.000000e-01 : f32
    %249 = vector.broadcast %cst_106 : f32 to vector<4x512xf32>
    %250 = arith.mulf %249, %248 : vector<4x512xf32>
    %cst_107 = arith.constant 5.000000e-01 : f32
    %251 = vector.broadcast %cst_107 : f32 to vector<4x512xf32>
    %252 = arith.addf %250, %251 : vector<4x512xf32>
    %cst_108 = arith.constant 5.000000e-01 : f32
    %253 = vector.broadcast %cst_108 : f32 to vector<4x512xf32>
    %254 = arith.mulf %253, %252 : vector<4x512xf32>
    %255 = math.tanh %254 : vector<4x512xf32>
    %cst_109 = arith.constant 5.000000e-01 : f32
    %256 = vector.broadcast %cst_109 : f32 to vector<4x512xf32>
    %257 = arith.mulf %256, %255 : vector<4x512xf32>
    %cst_110 = arith.constant 5.000000e-01 : f32
    %258 = vector.broadcast %cst_110 : f32 to vector<4x512xf32>
    %259 = arith.addf %257, %258 : vector<4x512xf32>
    %cst_111 = arith.constant 5.000000e-01 : f32
    %260 = vector.broadcast %cst_111 : f32 to vector<4x512xf32>
    %261 = arith.mulf %260, %259 : vector<4x512xf32>
    %262 = math.tanh %261 : vector<4x512xf32>
    %cst_112 = arith.constant 5.000000e-01 : f32
    %263 = vector.broadcast %cst_112 : f32 to vector<4x512xf32>
    %264 = arith.mulf %263, %262 : vector<4x512xf32>
    %cst_113 = arith.constant 5.000000e-01 : f32
    %265 = vector.broadcast %cst_113 : f32 to vector<4x512xf32>
    %266 = arith.addf %264, %265 : vector<4x512xf32>
    %cst_114 = arith.constant 5.000000e-01 : f32
    %267 = vector.broadcast %cst_114 : f32 to vector<4x512xf32>
    %268 = arith.mulf %267, %266 : vector<4x512xf32>
    %269 = math.tanh %268 : vector<4x512xf32>
    %cst_115 = arith.constant 5.000000e-01 : f32
    %270 = vector.broadcast %cst_115 : f32 to vector<4x512xf32>
    %271 = arith.mulf %270, %269 : vector<4x512xf32>
    %cst_116 = arith.constant 5.000000e-01 : f32
    %272 = vector.broadcast %cst_116 : f32 to vector<4x512xf32>
    %273 = arith.addf %271, %272 : vector<4x512xf32>
    %cst_117 = arith.constant 5.000000e-01 : f32
    %274 = vector.broadcast %cst_117 : f32 to vector<4x512xf32>
    %275 = arith.mulf %274, %273 : vector<4x512xf32>
    %276 = math.tanh %275 : vector<4x512xf32>
    %cst_118 = arith.constant 5.000000e-01 : f32
    %277 = vector.broadcast %cst_118 : f32 to vector<4x512xf32>
    %278 = arith.mulf %277, %276 : vector<4x512xf32>
    %cst_119 = arith.constant 5.000000e-01 : f32
    %279 = vector.broadcast %cst_119 : f32 to vector<4x512xf32>
    %280 = arith.addf %278, %279 : vector<4x512xf32>
    %cst_120 = arith.constant 5.000000e-01 : f32
    %281 = vector.broadcast %cst_120 : f32 to vector<4x512xf32>
    %282 = arith.mulf %281, %280 : vector<4x512xf32>
    %283 = math.tanh %282 : vector<4x512xf32>
    %cst_121 = arith.constant 5.000000e-01 : f32
    %284 = vector.broadcast %cst_121 : f32 to vector<4x512xf32>
    %285 = arith.mulf %284, %283 : vector<4x512xf32>
    %cst_122 = arith.constant 5.000000e-01 : f32
    %286 = vector.broadcast %cst_122 : f32 to vector<4x512xf32>
    %287 = arith.addf %285, %286 : vector<4x512xf32>
    %cst_123 = arith.constant 5.000000e-01 : f32
    %288 = vector.broadcast %cst_123 : f32 to vector<4x512xf32>
    %289 = arith.mulf %288, %287 : vector<4x512xf32>
    %290 = math.tanh %289 : vector<4x512xf32>
    %cst_124 = arith.constant 5.000000e-01 : f32
    %291 = vector.broadcast %cst_124 : f32 to vector<4x512xf32>
    %292 = arith.mulf %291, %290 : vector<4x512xf32>
    %cst_125 = arith.constant 5.000000e-01 : f32
    %293 = vector.broadcast %cst_125 : f32 to vector<4x512xf32>
    %294 = arith.addf %292, %293 : vector<4x512xf32>
    %cst_126 = arith.constant 5.000000e-01 : f32
    %295 = vector.broadcast %cst_126 : f32 to vector<4x512xf32>
    %296 = arith.mulf %295, %294 : vector<4x512xf32>
    %297 = math.tanh %296 : vector<4x512xf32>
    %cst_127 = arith.constant 5.000000e-01 : f32
    %298 = vector.broadcast %cst_127 : f32 to vector<4x512xf32>
    %299 = arith.mulf %298, %297 : vector<4x512xf32>
    %cst_128 = arith.constant 5.000000e-01 : f32
    %300 = vector.broadcast %cst_128 : f32 to vector<4x512xf32>
    %301 = arith.addf %299, %300 : vector<4x512xf32>
    %cst_129 = arith.constant 5.000000e-01 : f32
    %302 = vector.broadcast %cst_129 : f32 to vector<4x512xf32>
    %303 = arith.mulf %302, %301 : vector<4x512xf32>
    %304 = math.tanh %303 : vector<4x512xf32>
    %cst_130 = arith.constant 5.000000e-01 : f32
    %305 = vector.broadcast %cst_130 : f32 to vector<4x512xf32>
    %306 = arith.mulf %305, %304 : vector<4x512xf32>
    %cst_131 = arith.constant 5.000000e-01 : f32
    %307 = vector.broadcast %cst_131 : f32 to vector<4x512xf32>
    %308 = arith.addf %306, %307 : vector<4x512xf32>
    %cst_132 = arith.constant 5.000000e-01 : f32
    %309 = vector.broadcast %cst_132 : f32 to vector<4x512xf32>
    %310 = arith.mulf %309, %308 : vector<4x512xf32>
    %311 = math.tanh %310 : vector<4x512xf32>
    %cst_133 = arith.constant 5.000000e-01 : f32
    %312 = vector.broadcast %cst_133 : f32 to vector<4x512xf32>
    %313 = arith.mulf %312, %311 : vector<4x512xf32>
    %cst_134 = arith.constant 5.000000e-01 : f32
    %314 = vector.broadcast %cst_134 : f32 to vector<4x512xf32>
    %315 = arith.addf %313, %314 : vector<4x512xf32>
    %cst_135 = arith.constant 5.000000e-01 : f32
    %316 = vector.broadcast %cst_135 : f32 to vector<4x512xf32>
    %317 = arith.mulf %316, %315 : vector<4x512xf32>
    %318 = math.tanh %317 : vector<4x512xf32>
    %cst_136 = arith.constant 5.000000e-01 : f32
    %319 = vector.broadcast %cst_136 : f32 to vector<4x512xf32>
    %320 = arith.mulf %319, %318 : vector<4x512xf32>
    %cst_137 = arith.constant 5.000000e-01 : f32
    %321 = vector.broadcast %cst_137 : f32 to vector<4x512xf32>
    %322 = arith.addf %320, %321 : vector<4x512xf32>
    %cst_138 = arith.constant 5.000000e-01 : f32
    %323 = vector.broadcast %cst_138 : f32 to vector<4x512xf32>
    %324 = arith.mulf %323, %322 : vector<4x512xf32>
    %325 = math.tanh %324 : vector<4x512xf32>
    %cst_139 = arith.constant 5.000000e-01 : f32
    %326 = vector.broadcast %cst_139 : f32 to vector<4x512xf32>
    %327 = arith.mulf %326, %325 : vector<4x512xf32>
    %cst_140 = arith.constant 5.000000e-01 : f32
    %328 = vector.broadcast %cst_140 : f32 to vector<4x512xf32>
    %329 = arith.addf %327, %328 : vector<4x512xf32>
    %cst_141 = arith.constant 5.000000e-01 : f32
    %330 = vector.broadcast %cst_141 : f32 to vector<4x512xf32>
    %331 = arith.mulf %330, %329 : vector<4x512xf32>
    %332 = math.tanh %331 : vector<4x512xf32>
    %cst_142 = arith.constant 5.000000e-01 : f32
    %333 = vector.broadcast %cst_142 : f32 to vector<4x512xf32>
    %334 = arith.mulf %333, %332 : vector<4x512xf32>
    %cst_143 = arith.constant 5.000000e-01 : f32
    %335 = vector.broadcast %cst_143 : f32 to vector<4x512xf32>
    %336 = arith.addf %334, %335 : vector<4x512xf32>
    %cst_144 = arith.constant 5.000000e-01 : f32
    %337 = vector.broadcast %cst_144 : f32 to vector<4x512xf32>
    %338 = arith.mulf %337, %336 : vector<4x512xf32>
    %339 = math.tanh %338 : vector<4x512xf32>
    %cst_145 = arith.constant 5.000000e-01 : f32
    %340 = vector.broadcast %cst_145 : f32 to vector<4x512xf32>
    %341 = arith.mulf %340, %339 : vector<4x512xf32>
    %cst_146 = arith.constant 5.000000e-01 : f32
    %342 = vector.broadcast %cst_146 : f32 to vector<4x512xf32>
    %343 = arith.addf %341, %342 : vector<4x512xf32>
    %cst_147 = arith.constant 5.000000e-01 : f32
    %344 = vector.broadcast %cst_147 : f32 to vector<4x512xf32>
    %345 = arith.mulf %344, %343 : vector<4x512xf32>
    %346 = math.tanh %345 : vector<4x512xf32>
    %cst_148 = arith.constant 5.000000e-01 : f32
    %347 = vector.broadcast %cst_148 : f32 to vector<4x512xf32>
    %348 = arith.mulf %347, %346 : vector<4x512xf32>
    %cst_149 = arith.constant 5.000000e-01 : f32
    %349 = vector.broadcast %cst_149 : f32 to vector<4x512xf32>
    %350 = arith.addf %348, %349 : vector<4x512xf32>
    %cst_150 = arith.constant 5.000000e-01 : f32
    %351 = vector.broadcast %cst_150 : f32 to vector<4x512xf32>
    %352 = arith.mulf %351, %350 : vector<4x512xf32>
    %353 = math.tanh %352 : vector<4x512xf32>
    %cst_151 = arith.constant 5.000000e-01 : f32
    %354 = vector.broadcast %cst_151 : f32 to vector<4x512xf32>
    %355 = arith.mulf %354, %353 : vector<4x512xf32>
    %cst_152 = arith.constant 5.000000e-01 : f32
    %356 = vector.broadcast %cst_152 : f32 to vector<4x512xf32>
    %357 = arith.addf %355, %356 : vector<4x512xf32>
    %cst_153 = arith.constant 5.000000e-01 : f32
    %358 = vector.broadcast %cst_153 : f32 to vector<4x512xf32>
    %359 = arith.mulf %358, %357 : vector<4x512xf32>
    %360 = math.tanh %359 : vector<4x512xf32>
    %cst_154 = arith.constant 5.000000e-01 : f32
    %361 = vector.broadcast %cst_154 : f32 to vector<4x512xf32>
    %362 = arith.mulf %361, %360 : vector<4x512xf32>
    %cst_155 = arith.constant 5.000000e-01 : f32
    %363 = vector.broadcast %cst_155 : f32 to vector<4x512xf32>
    %364 = arith.addf %362, %363 : vector<4x512xf32>
    %cst_156 = arith.constant 5.000000e-01 : f32
    %365 = vector.broadcast %cst_156 : f32 to vector<4x512xf32>
    %366 = arith.mulf %365, %364 : vector<4x512xf32>
    %367 = math.tanh %366 : vector<4x512xf32>
    %cst_157 = arith.constant 5.000000e-01 : f32
    %368 = vector.broadcast %cst_157 : f32 to vector<4x512xf32>
    %369 = arith.mulf %368, %367 : vector<4x512xf32>
    %cst_158 = arith.constant 5.000000e-01 : f32
    %370 = vector.broadcast %cst_158 : f32 to vector<4x512xf32>
    %371 = arith.addf %369, %370 : vector<4x512xf32>
    %cst_159 = arith.constant 5.000000e-01 : f32
    %372 = vector.broadcast %cst_159 : f32 to vector<4x512xf32>
    %373 = arith.mulf %372, %371 : vector<4x512xf32>
    %374 = math.tanh %373 : vector<4x512xf32>
    %cst_160 = arith.constant 5.000000e-01 : f32
    %375 = vector.broadcast %cst_160 : f32 to vector<4x512xf32>
    %376 = arith.mulf %375, %374 : vector<4x512xf32>
    %cst_161 = arith.constant 5.000000e-01 : f32
    %377 = vector.broadcast %cst_161 : f32 to vector<4x512xf32>
    %378 = arith.addf %376, %377 : vector<4x512xf32>
    %cst_162 = arith.constant 5.000000e-01 : f32
    %379 = vector.broadcast %cst_162 : f32 to vector<4x512xf32>
    %380 = arith.mulf %379, %378 : vector<4x512xf32>
    %381 = math.tanh %380 : vector<4x512xf32>
    %cst_163 = arith.constant 5.000000e-01 : f32
    %382 = vector.broadcast %cst_163 : f32 to vector<4x512xf32>
    %383 = arith.mulf %382, %381 : vector<4x512xf32>
    %cst_164 = arith.constant 5.000000e-01 : f32
    %384 = vector.broadcast %cst_164 : f32 to vector<4x512xf32>
    %385 = arith.addf %383, %384 : vector<4x512xf32>
    %cst_165 = arith.constant 5.000000e-01 : f32
    %386 = vector.broadcast %cst_165 : f32 to vector<4x512xf32>
    %387 = arith.mulf %386, %385 : vector<4x512xf32>
    %388 = math.tanh %387 : vector<4x512xf32>
    %cst_166 = arith.constant 5.000000e-01 : f32
    %389 = vector.broadcast %cst_166 : f32 to vector<4x512xf32>
    %390 = arith.mulf %389, %388 : vector<4x512xf32>
    %cst_167 = arith.constant 5.000000e-01 : f32
    %391 = vector.broadcast %cst_167 : f32 to vector<4x512xf32>
    %392 = arith.addf %390, %391 : vector<4x512xf32>
    %cst_168 = arith.constant 5.000000e-01 : f32
    %393 = vector.broadcast %cst_168 : f32 to vector<4x512xf32>
    %394 = arith.mulf %393, %392 : vector<4x512xf32>
    %395 = math.tanh %394 : vector<4x512xf32>
    %cst_169 = arith.constant 5.000000e-01 : f32
    %396 = vector.broadcast %cst_169 : f32 to vector<4x512xf32>
    %397 = arith.mulf %396, %395 : vector<4x512xf32>
    %cst_170 = arith.constant 5.000000e-01 : f32
    %398 = vector.broadcast %cst_170 : f32 to vector<4x512xf32>
    %399 = arith.addf %397, %398 : vector<4x512xf32>
    %cst_171 = arith.constant 5.000000e-01 : f32
    %400 = vector.broadcast %cst_171 : f32 to vector<4x512xf32>
    %401 = arith.mulf %400, %399 : vector<4x512xf32>
    %402 = math.tanh %401 : vector<4x512xf32>
    %cst_172 = arith.constant 5.000000e-01 : f32
    %403 = vector.broadcast %cst_172 : f32 to vector<4x512xf32>
    %404 = arith.mulf %403, %402 : vector<4x512xf32>
    %cst_173 = arith.constant 5.000000e-01 : f32
    %405 = vector.broadcast %cst_173 : f32 to vector<4x512xf32>
    %406 = arith.addf %404, %405 : vector<4x512xf32>
    %cst_174 = arith.constant 5.000000e-01 : f32
    %407 = vector.broadcast %cst_174 : f32 to vector<4x512xf32>
    %408 = arith.mulf %407, %406 : vector<4x512xf32>
    %409 = math.tanh %408 : vector<4x512xf32>
    %cst_175 = arith.constant 5.000000e-01 : f32
    %410 = vector.broadcast %cst_175 : f32 to vector<4x512xf32>
    %411 = arith.mulf %410, %409 : vector<4x512xf32>
    %cst_176 = arith.constant 5.000000e-01 : f32
    %412 = vector.broadcast %cst_176 : f32 to vector<4x512xf32>
    %413 = arith.addf %411, %412 : vector<4x512xf32>
    %cst_177 = arith.constant 5.000000e-01 : f32
    %414 = vector.broadcast %cst_177 : f32 to vector<4x512xf32>
    %415 = arith.mulf %414, %413 : vector<4x512xf32>
    %416 = math.tanh %415 : vector<4x512xf32>
    %cst_178 = arith.constant 5.000000e-01 : f32
    %417 = vector.broadcast %cst_178 : f32 to vector<4x512xf32>
    %418 = arith.mulf %417, %416 : vector<4x512xf32>
    %cst_179 = arith.constant 5.000000e-01 : f32
    %419 = vector.broadcast %cst_179 : f32 to vector<4x512xf32>
    %420 = arith.addf %418, %419 : vector<4x512xf32>
    %cst_180 = arith.constant 5.000000e-01 : f32
    %421 = vector.broadcast %cst_180 : f32 to vector<4x512xf32>
    %422 = arith.mulf %421, %420 : vector<4x512xf32>
    %423 = math.tanh %422 : vector<4x512xf32>
    %cst_181 = arith.constant 5.000000e-01 : f32
    %424 = vector.broadcast %cst_181 : f32 to vector<4x512xf32>
    %425 = arith.mulf %424, %423 : vector<4x512xf32>
    %cst_182 = arith.constant 5.000000e-01 : f32
    %426 = vector.broadcast %cst_182 : f32 to vector<4x512xf32>
    %427 = arith.addf %425, %426 : vector<4x512xf32>
    %cst_183 = arith.constant 5.000000e-01 : f32
    %428 = vector.broadcast %cst_183 : f32 to vector<4x512xf32>
    %429 = arith.mulf %428, %427 : vector<4x512xf32>
    %430 = math.tanh %429 : vector<4x512xf32>
    %cst_184 = arith.constant 5.000000e-01 : f32
    %431 = vector.broadcast %cst_184 : f32 to vector<4x512xf32>
    %432 = arith.mulf %431, %430 : vector<4x512xf32>
    %cst_185 = arith.constant 5.000000e-01 : f32
    %433 = vector.broadcast %cst_185 : f32 to vector<4x512xf32>
    %434 = arith.addf %432, %433 : vector<4x512xf32>
    %cst_186 = arith.constant 5.000000e-01 : f32
    %435 = vector.broadcast %cst_186 : f32 to vector<4x512xf32>
    %436 = arith.mulf %435, %434 : vector<4x512xf32>
    %437 = math.tanh %436 : vector<4x512xf32>
    %cst_187 = arith.constant 5.000000e-01 : f32
    %438 = vector.broadcast %cst_187 : f32 to vector<4x512xf32>
    %439 = arith.mulf %438, %437 : vector<4x512xf32>
    %cst_188 = arith.constant 5.000000e-01 : f32
    %440 = vector.broadcast %cst_188 : f32 to vector<4x512xf32>
    %441 = arith.addf %439, %440 : vector<4x512xf32>
    %cst_189 = arith.constant 5.000000e-01 : f32
    %442 = vector.broadcast %cst_189 : f32 to vector<4x512xf32>
    %443 = arith.mulf %442, %441 : vector<4x512xf32>
    %444 = math.tanh %443 : vector<4x512xf32>
    %cst_190 = arith.constant 5.000000e-01 : f32
    %445 = vector.broadcast %cst_190 : f32 to vector<4x512xf32>
    %446 = arith.mulf %445, %444 : vector<4x512xf32>
    %cst_191 = arith.constant 5.000000e-01 : f32
    %447 = vector.broadcast %cst_191 : f32 to vector<4x512xf32>
    %448 = arith.addf %446, %447 : vector<4x512xf32>
    %c0_192 = arith.constant 0 : index
    %c0_193 = arith.constant 0 : index
    %449 = vector.load %arg2[%c0_192, %c0_193] : memref<4x512xf32, #tpu.memory_space<vmem>>, vector<4x512xf32>
    tpu.vector_store %arg2[%c0_192, %c0_193], %448 {strides = array<i32>} : memref<4x512xf32, #tpu.memory_space<vmem>>, vector<4x512xf32>,
    return
  }
  func.func @transform_0(%arg0: i32) -> (i32, i32) {
    %c0_i32 = arith.constant 0 : i32
    %c0_i32_0 = arith.constant 0 : i32
    return %arg0, %c0_i32 : i32, i32
  }
  func.func @transform_1(%arg0: i32) -> (i32, i32) {
    %c0_i32 = arith.constant 0 : i32
    %c0_i32_0 = arith.constant 0 : i32
    return %arg0, %c0_i32 : i32, i32
  }
}

</mosaic_0001>

<bundles_post_ra>
// kernel: tpu_custom_call.1
= control target key start
LH: loop header
LB: loop body
LE: loop exit
PB: predicated region body
PF: predicated region fallthrough
CT: control target
= control target key end

     0   :  { %6 = vsyncpa [#allocation3], 0  ;;  %s894_s0 = inlined_call_operand.hbm [shape: f32[4,512], index: 0, kind: input, shape index: {}]   ;;  %s895_s1 = inlined_call_operand.hbm [shape: f32[4,512], index: 1, kind: output, shape index: {}]  }
   0x1   :  { %7 = vsyncpa [#allocation4], 0  ;;  %s858_s6 = smov [#allocation2]   ;;  %s810_s10 = scalar_lea.hbm %s894_s0, 256 }
   0x2   :  { %s14_s7 = sshll.u32 %s858_s6, 4  ;;  %p811_p0 = scmp.ne.s32.totalorder %s894_s0, %s810_s10  ;;  %s15_s7 = int_to_ptr.vmem [resolvable:$true] %s14_s7 }
   0x3   :  { %p814_p1 = scmp.lt.u32.totalorder %s810_s10, %s894_s0 }
   0x5   :  { %p816_p2 = pnand %p814_p1, %p811_p0 }
   0x7   :  { %819 = shalt.err (!%p816_p2)
}
   0x8   :  { %s820_s15 = scalar_lea.vmem %s15_s7, 256  ;;  %p825_p4 = scmp.lt.s32.totalorder %s15_s7, %s15_s7 }
   0x9   :  { %p821_p3 = scmp.ne.s32.totalorder %s15_s7, %s820_s15  ;;  %p826_p5 = scmp.lt.s32.totalorder %s820_s15, %s820_s15 }
   0xb   :  { %p827_p6 = por %p826_p5, %p825_p4 }
   0xd   :  { %p828_p7 = pnand %p827_p6, %p821_p3 }
   0xf   :  { %831 = shalt.err (!%p828_p7)
}
  0x10   :  { %17 = dma.hbm_to_vmem [thread:$0]  %s894_s0, 256, %s15_s7, [#allocation3]  }
  0x11   :  { %854 = dma.done.wait [#allocation3], 256  }
  0x12   :  { %855 = vsyncadd [#allocation3], 4294967040  ;;  %v21_v0 = vld [vmem:[#allocation2] sm:$0xff]  ;;  %v22_v1 = vld [vmem:[#allocation2 + $0x8] sm:$0xff]  ;;  %s859_s0 = smov [#allocation5]  }
  0x13   :  { %v23_v2 = vmul.f32 0.5, %v21_v0  ;;  %v24_v3 = vmul.f32 0.5, %v22_v1  ;;  %s543_s18 = sshll.u32 %s859_s0, 4  ;;  %s544_s18 = int_to_ptr.vmem [resolvable:$true] %s543_s18 }
  0x14   :  { %s832_s19 = scalar_lea.vmem %s544_s18, 256  ;;  %p837_p9 = scmp.lt.s32.totalorder %s544_s18, %s544_s18 }
  0x15   :  { %554 = vtanh.f32 %v23_v2  ;;  %p833_p8 = scmp.ne.s32.totalorder %s544_s18, %s832_s19  ;;  %p838_p10 = scmp.lt.s32.totalorder %s832_s19, %s832_s19 }
  0x16   :  { %556 = vtanh.f32 %v24_v3 }
  0x17   :  { %p839_p11 = por %p838_p10, %p837_p9 }
  0x19   :  { %p840_p12 = pnand %p839_p11, %p833_p8 }
  0x1f   :  { %v555_v4 = vpop.eup %554 }
  0x20   :  { %v557_v5 = vpop.eup %556  ;;  %v27_v6 = vmul.f32 0.5, %v555_v4 }
  0x21   :  { %v28_v7 = vmul.f32 0.5, %v557_v5 }
  0x22   :  { %v29_v8 = vadd.f32 0.5, %v27_v6 }
  0x23   :  { %v30_v9 = vadd.f32 0.5, %v28_v7 }
  0x24   :  { %v31_v10 = vmul.f32 0.5, %v29_v8 }
  0x25   :  { %v32_v11 = vmul.f32 0.5, %v30_v9 }
  0x26   :  { %558 = vtanh.f32 %v31_v10 }
  0x27   :  { %560 = vtanh.f32 %v32_v11 }
  0x30   :  { %v559_v12 = vpop.eup %558 }
  0x31   :  { %v561_v13 = vpop.eup %560  ;;  %v35_v14 = vmul.f32 0.5, %v559_v12 }
  0x32   :  { %v36_v15 = vmul.f32 0.5, %v561_v13 }
  0x33   :  { %v37_v16 = vadd.f32 0.5, %v35_v14 }
  0x34   :  { %v38_v17 = vadd.f32 0.5, %v36_v15 }
  0x35   :  { %v39_v18 = vmul.f32 0.5, %v37_v16 }
  0x36   :  { %v40_v19 = vmul.f32 0.5, %v38_v17 }
  0x37   :  { %562 = vtanh.f32 %v39_v18 }
  0x38   :  { %564 = vtanh.f32 %v40_v19 }
  0x41   :  { %v563_v20 = vpop.eup %562 }
  0x42   :  { %v565_v21 = vpop.eup %564  ;;  %v43_v22 = vmul.f32 0.5, %v563_v20 }
  0x43   :  { %v44_v23 = vmul.f32 0.5, %v565_v21 }
  0x44   :  { %v45_v24 = vadd.f32 0.5, %v43_v22 }
  0x45   :  { %v46_v25 = vadd.f32 0.5, %v44_v23 }
  0x46   :  { %v47_v26 = vmul.f32 0.5, %v45_v24 }
  0x47   :  { %v48_v27 = vmul.f32 0.5, %v46_v25 }
  0x48   :  { %566 = vtanh.f32 %v47_v26 }
  0x49   :  { %568 = vtanh.f32 %v48_v27 }
  0x52   :  { %v567_v28 = vpop.eup %566 }
  0x53   :  { %v569_v29 = vpop.eup %568  ;;  %v51_v30 = vmul.f32 0.5, %v567_v28 }
  0x54   :  { %v52_v31 = vmul.f32 0.5, %v569_v29 }
  0x55   :  { %v53_v32 = vadd.f32 0.5, %v51_v30 }
  0x56   :  { %v54_v33 = vadd.f32 0.5, %v52_v31 }
  0x57   :  { %v55_v34 = vmul.f32 0.5, %v53_v32 }
  0x58   :  { %v56_v35 = vmul.f32 0.5, %v54_v33 }
  0x59   :  { %570 = vtanh.f32 %v55_v34 }
  0x5a   :  { %572 = vtanh.f32 %v56_v35 }
  0x63   :  { %v571_v36 = vpop.eup %570 }
  0x64   :  { %v573_v37 = vpop.eup %572  ;;  %v59_v38 = vmul.f32 0.5, %v571_v36 }
  0x65   :  { %v60_v39 = vmul.f32 0.5, %v573_v37 }
  0x66   :  { %v61_v40 = vadd.f32 0.5, %v59_v38 }
  0x67   :  { %v62_v41 = vadd.f32 0.5, %v60_v39 }
  0x68   :  { %v63_v42 = vmul.f32 0.5, %v61_v40 }
  0x69   :  { %v64_v43 = vmul.f32 0.5, %v62_v41 }
  0x6a   :  { %574 = vtanh.f32 %v63_v42 }
  0x6b   :  { %576 = vtanh.f32 %v64_v43 }
  0x74   :  { %v575_v44 = vpop.eup %574 }
  0x75   :  { %v577_v45 = vpop.eup %576  ;;  %v67_v46 = vmul.f32 0.5, %v575_v44 }
  0x76   :  { %v68_v47 = vmul.f32 0.5, %v577_v45 }
  0x77   :  { %v69_v48 = vadd.f32 0.5, %v67_v46 }
  0x78   :  { %v70_v49 = vadd.f32 0.5, %v68_v47 }
  0x79   :  { %v71_v50 = vmul.f32 0.5, %v69_v48 }
  0x7a   :  { %v72_v51 = vmul.f32 0.5, %v70_v49 }
  0x7b   :  { %578 = vtanh.f32 %v71_v50 }
  0x7c   :  { %580 = vtanh.f32 %v72_v51 }
  0x85   :  { %v579_v52 = vpop.eup %578 }
  0x86   :  { %v581_v53 = vpop.eup %580  ;;  %v75_v54 = vmul.f32 0.5, %v579_v52 }
  0x87   :  { %v76_v55 = vmul.f32 0.5, %v581_v53 }
  0x88   :  { %v77_v56 = vadd.f32 0.5, %v75_v54 }
  0x89   :  { %v78_v57 = vadd.f32 0.5, %v76_v55 }
  0x8a   :  { %v79_v58 = vmul.f32 0.5, %v77_v56 }
  0x8b   :  { %v80_v59 = vmul.f32 0.5, %v78_v57 }
  0x8c   :  { %582 = vtanh.f32 %v79_v58 }
  0x8d   :  { %584 = vtanh.f32 %v80_v59 }
  0x96   :  { %v583_v60 = vpop.eup %582 }
  0x97   :  { %v585_v61 = vpop.eup %584  ;;  %v83_v62 = vmul.f32 0.5, %v583_v60 }
  0x98   :  { %v84_v63 = vmul.f32 0.5, %v585_v61 }
  0x99   :  { %v85_v0 = vadd.f32 0.5, %v83_v62 }
  0x9a   :  { %v86_v1 = vadd.f32 0.5, %v84_v63 }
  0x9b   :  { %v87_v2 = vmul.f32 0.5, %v85_v0 }
  0x9c   :  { %v88_v3 = vmul.f32 0.5, %v86_v1 }
  0x9d   :  { %586 = vtanh.f32 %v87_v2 }
  0x9e   :  { %588 = vtanh.f32 %v88_v3 }
  0xa7   :  { %v587_v4 = vpop.eup %586 }
  0xa8   :  { %v589_v5 = vpop.eup %588  ;;  %v91_v6 = vmul.f32 0.5, %v587_v4 }
  0xa9   :  { %v92_v7 = vmul.f32 0.5, %v589_v5 }
  0xaa   :  { %v93_v8 = vadd.f32 0.5, %v91_v6 }
  0xab   :  { %v94_v9 = vadd.f32 0.5, %v92_v7 }
  0xac   :  { %v95_v10 = vmul.f32 0.5, %v93_v8 }
  0xad   :  { %v96_v11 = vmul.f32 0.5, %v94_v9 }
  0xae   :  { %590 = vtanh.f32 %v95_v10 }
  0xaf   :  { %592 = vtanh.f32 %v96_v11 }
  0xb8   :  { %v591_v12 = vpop.eup %590 }
  0xb9   :  { %v593_v13 = vpop.eup %592  ;;  %v99_v14 = vmul.f32 0.5, %v591_v12 }
  0xba   :  { %v100_v15 = vmul.f32 0.5, %v593_v13 }
  0xbb   :  { %v101_v16 = vadd.f32 0.5, %v99_v14 }
  0xbc   :  { %v102_v17 = vadd.f32 0.5, %v100_v15 }
  0xbd   :  { %v103_v18 = vmul.f32 0.5, %v101_v16 }
  0xbe   :  { %v104_v19 = vmul.f32 0.5, %v102_v17 }
  0xbf   :  { %594 = vtanh.f32 %v103_v18 }
  0xc0   :  { %596 = vtanh.f32 %v104_v19 }
  0xc9   :  { %v595_v20 = vpop.eup %594 }
  0xca   :  { %v597_v21 = vpop.eup %596  ;;  %v107_v22 = vmul.f32 0.5, %v595_v20 }
  0xcb   :  { %v108_v23 = vmul.f32 0.5, %v597_v21 }
  0xcc   :  { %v109_v24 = vadd.f32 0.5, %v107_v22 }
  0xcd   :  { %v110_v25 = vadd.f32 0.5, %v108_v23 }
  0xce   :  { %v111_v26 = vmul.f32 0.5, %v109_v24 }
  0xcf   :  { %v112_v27 = vmul.f32 0.5, %v110_v25 }
  0xd0   :  { %598 = vtanh.f32 %v111_v26 }
  0xd1   :  { %600 = vtanh.f32 %v112_v27 }
  0xda   :  { %v599_v28 = vpop.eup %598 }
  0xdb   :  { %v601_v29 = vpop.eup %600  ;;  %v115_v30 = vmul.f32 0.5, %v599_v28 }
  0xdc   :  { %v116_v31 = vmul.f32 0.5, %v601_v29 }
  0xdd   :  { %v117_v32 = vadd.f32 0.5, %v115_v30 }
  0xde   :  { %v118_v33 = vadd.f32 0.5, %v116_v31 }
  0xdf   :  { %v119_v34 = vmul.f32 0.5, %v117_v32 }
  0xe0   :  { %v120_v35 = vmul.f32 0.5, %v118_v33 }
  0xe1   :  { %602 = vtanh.f32 %v119_v34 }
  0xe2   :  { %604 = vtanh.f32 %v120_v35 }
  0xeb   :  { %v603_v36 = vpop.eup %602 }
  0xec   :  { %v605_v37 = vpop.eup %604  ;;  %v123_v38 = vmul.f32 0.5, %v603_v36 }
  0xed   :  { %v124_v39 = vmul.f32 0.5, %v605_v37 }
  0xee   :  { %v125_v40 = vadd.f32 0.5, %v123_v38 }
  0xef   :  { %v126_v41 = vadd.f32 0.5, %v124_v39 }
  0xf0   :  { %v127_v42 = vmul.f32 0.5, %v125_v40 }
  0xf1   :  { %v128_v43 = vmul.f32 0.5, %v126_v41 }
  0xf2   :  { %606 = vtanh.f32 %v127_v42 }
  0xf3   :  { %608 = vtanh.f32 %v128_v43 }
  0xfc   :  { %v607_v44 = vpop.eup %606 }
  0xfd   :  { %v609_v45 = vpop.eup %608  ;;  %v131_v46 = vmul.f32 0.5, %v607_v44 }
  0xfe   :  { %v132_v47 = vmul.f32 0.5, %v609_v45 }
  0xff   :  { %v133_v48 = vadd.f32 0.5, %v131_v46 }
 0x100   :  { %v134_v49 = vadd.f32 0.5, %v132_v47 }
 0x101   :  { %v135_v50 = vmul.f32 0.5, %v133_v48 }
 0x102   :  { %v136_v51 = vmul.f32 0.5, %v134_v49 }
 0x103   :  { %610 = vtanh.f32 %v135_v50 }
 0x104   :  { %612 = vtanh.f32 %v136_v51 }
 0x10d   :  { %v611_v52 = vpop.eup %610 }
 0x10e   :  { %v613_v53 = vpop.eup %612  ;;  %v139_v54 = vmul.f32 0.5, %v611_v52 }
 0x10f   :  { %v140_v55 = vmul.f32 0.5, %v613_v53 }
 0x110   :  { %v141_v56 = vadd.f32 0.5, %v139_v54 }
 0x111   :  { %v142_v57 = vadd.f32 0.5, %v140_v55 }
 0x112   :  { %v143_v58 = vmul.f32 0.5, %v141_v56 }
 0x113   :  { %v144_v59 = vmul.f32 0.5, %v142_v57 }
 0x114   :  { %614 = vtanh.f32 %v143_v58 }
 0x115   :  { %616 = vtanh.f32 %v144_v59 }
 0x11e   :  { %v615_v60 = vpop.eup %614 }
 0x11f   :  { %v617_v61 = vpop.eup %616  ;;  %v147_v62 = vmul.f32 0.5, %v615_v60 }
 0x120   :  { %v148_v63 = vmul.f32 0.5, %v617_v61 }
 0x121   :  { %v149_v0 = vadd.f32 0.5, %v147_v62 }
 0x122   :  { %v150_v1 = vadd.f32 0.5, %v148_v63 }
 0x123   :  { %v151_v2 = vmul.f32 0.5, %v149_v0 }
 0x124   :  { %v152_v3 = vmul.f32 0.5, %v150_v1 }
 0x125   :  { %618 = vtanh.f32 %v151_v2 }
 0x126   :  { %620 = vtanh.f32 %v152_v3 }
 0x12f   :  { %v619_v4 = vpop.eup %618 }
 0x130   :  { %v621_v5 = vpop.eup %620  ;;  %v155_v6 = vmul.f32 0.5, %v619_v4 }
 0x131   :  { %v156_v7 = vmul.f32 0.5, %v621_v5 }
 0x132   :  { %v157_v8 = vadd.f32 0.5, %v155_v6 }
 0x133   :  { %v158_v9 = vadd.f32 0.5, %v156_v7 }
 0x134   :  { %v159_v10 = vmul.f32 0.5, %v157_v8 }
 0x135   :  { %v160_v11 = vmul.f32 0.5, %v158_v9 }
 0x136   :  { %622 = vtanh.f32 %v159_v10 }
 0x137   :  { %624 = vtanh.f32 %v160_v11 }
 0x140   :  { %v623_v12 = vpop.eup %622 }
 0x141   :  { %v625_v13 = vpop.eup %624  ;;  %v163_v14 = vmul.f32 0.5, %v623_v12 }
 0x142   :  { %v164_v15 = vmul.f32 0.5, %v625_v13 }
 0x143   :  { %v165_v16 = vadd.f32 0.5, %v163_v14 }
 0x144   :  { %v166_v17 = vadd.f32 0.5, %v164_v15 }
 0x145   :  { %v167_v18 = vmul.f32 0.5, %v165_v16 }
 0x146   :  { %v168_v19 = vmul.f32 0.5, %v166_v17 }
 0x147   :  { %626 = vtanh.f32 %v167_v18 }
 0x148   :  { %628 = vtanh.f32 %v168_v19 }
 0x151   :  { %v627_v20 = vpop.eup %626 }
 0x152   :  { %v629_v21 = vpop.eup %628  ;;  %v171_v22 = vmul.f32 0.5, %v627_v20 }
 0x153   :  { %v172_v23 = vmul.f32 0.5, %v629_v21 }
 0x154   :  { %v173_v24 = vadd.f32 0.5, %v171_v22 }
 0x155   :  { %v174_v25 = vadd.f32 0.5, %v172_v23 }
 0x156   :  { %v175_v26 = vmul.f32 0.5, %v173_v24 }
 0x157   :  { %v176_v27 = vmul.f32 0.5, %v174_v25 }
 0x158   :  { %630 = vtanh.f32 %v175_v26 }
 0x159   :  { %632 = vtanh.f32 %v176_v27 }
 0x162   :  { %v631_v28 = vpop.eup %630 }
 0x163   :  { %v633_v29 = vpop.eup %632  ;;  %v179_v30 = vmul.f32 0.5, %v631_v28 }
 0x164   :  { %v180_v31 = vmul.f32 0.5, %v633_v29 }
 0x165   :  { %v181_v32 = vadd.f32 0.5, %v179_v30 }
 0x166   :  { %v182_v33 = vadd.f32 0.5, %v180_v31 }
 0x167   :  { %v183_v34 = vmul.f32 0.5, %v181_v32 }
 0x168   :  { %v184_v35 = vmul.f32 0.5, %v182_v33 }
 0x169   :  { %634 = vtanh.f32 %v183_v34 }
 0x16a   :  { %636 = vtanh.f32 %v184_v35 }
 0x173   :  { %v635_v36 = vpop.eup %634 }
 0x174   :  { %v637_v37 = vpop.eup %636  ;;  %v187_v38 = vmul.f32 0.5, %v635_v36 }
 0x175   :  { %v188_v39 = vmul.f32 0.5, %v637_v37 }
 0x176   :  { %v189_v40 = vadd.f32 0.5, %v187_v38 }
 0x177   :  { %v190_v41 = vadd.f32 0.5, %v188_v39 }
 0x178   :  { %v191_v42 = vmul.f32 0.5, %v189_v40 }
 0x179   :  { %v192_v43 = vmul.f32 0.5, %v190_v41 }
 0x17a   :  { %638 = vtanh.f32 %v191_v42 }
 0x17b   :  { %640 = vtanh.f32 %v192_v43 }
 0x184   :  { %v639_v44 = vpop.eup %638 }
 0x185   :  { %v641_v45 = vpop.eup %640  ;;  %v195_v46 = vmul.f32 0.5, %v639_v44 }
 0x186   :  { %v196_v47 = vmul.f32 0.5, %v641_v45 }
 0x187   :  { %v197_v48 = vadd.f32 0.5, %v195_v46 }
 0x188   :  { %v198_v49 = vadd.f32 0.5, %v196_v47 }
 0x189   :  { %v199_v50 = vmul.f32 0.5, %v197_v48 }
 0x18a   :  { %v200_v51 = vmul.f32 0.5, %v198_v49 }
 0x18b   :  { %642 = vtanh.f32 %v199_v50 }
 0x18c   :  { %644 = vtanh.f32 %v200_v51 }
 0x195   :  { %v643_v52 = vpop.eup %642 }
 0x196   :  { %v645_v53 = vpop.eup %644  ;;  %v203_v54 = vmul.f32 0.5, %v643_v52 }
 0x197   :  { %v204_v55 = vmul.f32 0.5, %v645_v53 }
 0x198   :  { %v205_v56 = vadd.f32 0.5, %v203_v54 }
 0x199   :  { %v206_v57 = vadd.f32 0.5, %v204_v55 }
 0x19a   :  { %v207_v58 = vmul.f32 0.5, %v205_v56 }
 0x19b   :  { %v208_v59 = vmul.f32 0.5, %v206_v57 }
 0x19c   :  { %646 = vtanh.f32 %v207_v58 }
 0x19d   :  { %648 = vtanh.f32 %v208_v59 }
 0x1a6   :  { %v647_v60 = vpop.eup %646 }
 0x1a7   :  { %v649_v61 = vpop.eup %648  ;;  %v211_v62 = vmul.f32 0.5, %v647_v60 }
 0x1a8   :  { %v212_v63 = vmul.f32 0.5, %v649_v61 }
 0x1a9   :  { %v213_v0 = vadd.f32 0.5, %v211_v62 }
 0x1aa   :  { %v214_v1 = vadd.f32 0.5, %v212_v63 }
 0x1ab   :  { %v215_v2 = vmul.f32 0.5, %v213_v0 }
 0x1ac   :  { %v216_v3 = vmul.f32 0.5, %v214_v1 }
 0x1ad   :  { %650 = vtanh.f32 %v215_v2 }
 0x1ae   :  { %652 = vtanh.f32 %v216_v3 }
 0x1b7   :  { %v651_v4 = vpop.eup %650 }
 0x1b8   :  { %v653_v5 = vpop.eup %652  ;;  %v219_v6 = vmul.f32 0.5, %v651_v4 }
 0x1b9   :  { %v220_v7 = vmul.f32 0.5, %v653_v5 }
 0x1ba   :  { %v221_v8 = vadd.f32 0.5, %v219_v6 }
 0x1bb   :  { %v222_v9 = vadd.f32 0.5, %v220_v7 }
 0x1bc   :  { %v223_v10 = vmul.f32 0.5, %v221_v8 }
 0x1bd   :  { %v224_v11 = vmul.f32 0.5, %v222_v9 }
 0x1be   :  { %654 = vtanh.f32 %v223_v10 }
 0x1bf   :  { %656 = vtanh.f32 %v224_v11 }
 0x1c8   :  { %v655_v12 = vpop.eup %654 }
 0x1c9   :  { %v657_v13 = vpop.eup %656  ;;  %v227_v14 = vmul.f32 0.5, %v655_v12 }
 0x1ca   :  { %v228_v15 = vmul.f32 0.5, %v657_v13 }
 0x1cb   :  { %v229_v16 = vadd.f32 0.5, %v227_v14 }
 0x1cc   :  { %v230_v17 = vadd.f32 0.5, %v228_v15 }
 0x1cd   :  { %v231_v18 = vmul.f32 0.5, %v229_v16 }
 0x1ce   :  { %v232_v19 = vmul.f32 0.5, %v230_v17 }
 0x1cf   :  { %658 = vtanh.f32 %v231_v18 }
 0x1d0   :  { %660 = vtanh.f32 %v232_v19 }
 0x1d9   :  { %v659_v20 = vpop.eup %658 }
 0x1da   :  { %v661_v21 = vpop.eup %660  ;;  %v235_v22 = vmul.f32 0.5, %v659_v20 }
 0x1db   :  { %v236_v23 = vmul.f32 0.5, %v661_v21 }
 0x1dc   :  { %v237_v24 = vadd.f32 0.5, %v235_v22 }
 0x1dd   :  { %v238_v25 = vadd.f32 0.5, %v236_v23 }
 0x1de   :  { %v239_v26 = vmul.f32 0.5, %v237_v24 }
 0x1df   :  { %v240_v27 = vmul.f32 0.5, %v238_v25 }
 0x1e0   :  { %662 = vtanh.f32 %v239_v26 }
 0x1e1   :  { %664 = vtanh.f32 %v240_v27 }
 0x1ea   :  { %v663_v28 = vpop.eup %662 }
 0x1eb   :  { %v665_v29 = vpop.eup %664  ;;  %v243_v30 = vmul.f32 0.5, %v663_v28 }
 0x1ec   :  { %v244_v31 = vmul.f32 0.5, %v665_v29 }
 0x1ed   :  { %v245_v32 = vadd.f32 0.5, %v243_v30 }
 0x1ee   :  { %v246_v33 = vadd.f32 0.5, %v244_v31 }
 0x1ef   :  { %v247_v34 = vmul.f32 0.5, %v245_v32 }
 0x1f0   :  { %v248_v35 = vmul.f32 0.5, %v246_v33 }
 0x1f1   :  { %666 = vtanh.f32 %v247_v34 }
 0x1f2   :  { %668 = vtanh.f32 %v248_v35 }
 0x1fb   :  { %v667_v36 = vpop.eup %666 }
 0x1fc   :  { %v669_v37 = vpop.eup %668  ;;  %v251_v38 = vmul.f32 0.5, %v667_v36 }
 0x1fd   :  { %v252_v39 = vmul.f32 0.5, %v669_v37 }
 0x1fe   :  { %v253_v40 = vadd.f32 0.5, %v251_v38 }
 0x1ff   :  { %v254_v41 = vadd.f32 0.5, %v252_v39 }
 0x200   :  { %v255_v42 = vmul.f32 0.5, %v253_v40 }
 0x201   :  { %v256_v43 = vmul.f32 0.5, %v254_v41 }
 0x202   :  { %670 = vtanh.f32 %v255_v42 }
 0x203   :  { %672 = vtanh.f32 %v256_v43 }
 0x20c   :  { %v671_v44 = vpop.eup %670 }
 0x20d   :  { %v673_v45 = vpop.eup %672  ;;  %v259_v46 = vmul.f32 0.5, %v671_v44 }
 0x20e   :  { %v260_v47 = vmul.f32 0.5, %v673_v45 }
 0x20f   :  { %v261_v48 = vadd.f32 0.5, %v259_v46 }
 0x210   :  { %v262_v49 = vadd.f32 0.5, %v260_v47 }
 0x211   :  { %v263_v50 = vmul.f32 0.5, %v261_v48 }
 0x212   :  { %v264_v51 = vmul.f32 0.5, %v262_v49 }
 0x213   :  { %674 = vtanh.f32 %v263_v50 }
 0x214   :  { %676 = vtanh.f32 %v264_v51 }
 0x21d   :  { %v675_v52 = vpop.eup %674 }
 0x21e   :  { %v677_v53 = vpop.eup %676  ;;  %v267_v54 = vmul.f32 0.5, %v675_v52 }
 0x21f   :  { %v268_v55 = vmul.f32 0.5, %v677_v53 }
 0x220   :  { %v269_v56 = vadd.f32 0.5, %v267_v54 }
 0x221   :  { %v270_v57 = vadd.f32 0.5, %v268_v55 }
 0x222   :  { %v271_v58 = vmul.f32 0.5, %v269_v56 }
 0x223   :  { %v272_v59 = vmul.f32 0.5, %v270_v57 }
 0x224   :  { %678 = vtanh.f32 %v271_v58 }
 0x225   :  { %680 = vtanh.f32 %v272_v59 }
 0x22e   :  { %v679_v60 = vpop.eup %678 }
 0x22f   :  { %v681_v61 = vpop.eup %680  ;;  %v275_v62 = vmul.f32 0.5, %v679_v60 }
 0x230   :  { %v276_v63 = vmul.f32 0.5, %v681_v61 }
 0x231   :  { %v277_v0 = vadd.f32 0.5, %v275_v62 }
 0x232   :  { %v278_v1 = vadd.f32 0.5, %v276_v63 }
 0x233   :  { %v279_v2 = vmul.f32 0.5, %v277_v0 }
 0x234   :  { %v280_v3 = vmul.f32 0.5, %v278_v1 }
 0x235   :  { %682 = vtanh.f32 %v279_v2 }
 0x236   :  { %684 = vtanh.f32 %v280_v3 }
 0x23f   :  { %v683_v4 = vpop.eup %682 }
 0x240   :  { %v685_v5 = vpop.eup %684  ;;  %v283_v6 = vmul.f32 0.5, %v683_v4 }
 0x241   :  { %v284_v7 = vmul.f32 0.5, %v685_v5 }
 0x242   :  { %v285_v8 = vadd.f32 0.5, %v283_v6 }
 0x243   :  { %v286_v9 = vadd.f32 0.5, %v284_v7 }
 0x244   :  { %v287_v10 = vmul.f32 0.5, %v285_v8 }
 0x245   :  { %v288_v11 = vmul.f32 0.5, %v286_v9 }
 0x246   :  { %686 = vtanh.f32 %v287_v10 }
 0x247   :  { %688 = vtanh.f32 %v288_v11 }
 0x250   :  { %v687_v12 = vpop.eup %686 }
 0x251   :  { %v689_v13 = vpop.eup %688  ;;  %v291_v14 = vmul.f32 0.5, %v687_v12 }
 0x252   :  { %v292_v15 = vmul.f32 0.5, %v689_v13 }
 0x253   :  { %v293_v16 = vadd.f32 0.5, %v291_v14 }
 0x254   :  { %v294_v17 = vadd.f32 0.5, %v292_v15 }
 0x255   :  { %v295_v18 = vmul.f32 0.5, %v293_v16 }
 0x256   :  { %v296_v19 = vmul.f32 0.5, %v294_v17 }
 0x257   :  { %690 = vtanh.f32 %v295_v18 }
 0x258   :  { %692 = vtanh.f32 %v296_v19 }
 0x261   :  { %v691_v20 = vpop.eup %690 }
 0x262   :  { %v693_v21 = vpop.eup %692  ;;  %v299_v22 = vmul.f32 0.5, %v691_v20 }
 0x263   :  { %v300_v23 = vmul.f32 0.5, %v693_v21 }
 0x264   :  { %v301_v24 = vadd.f32 0.5, %v299_v22 }
 0x265   :  { %v302_v25 = vadd.f32 0.5, %v300_v23 }
 0x266   :  { %v303_v26 = vmul.f32 0.5, %v301_v24 }
 0x267   :  { %v304_v27 = vmul.f32 0.5, %v302_v25 }
 0x268   :  { %694 = vtanh.f32 %v303_v26 }
 0x269   :  { %696 = vtanh.f32 %v304_v27 }
 0x272   :  { %v695_v28 = vpop.eup %694 }
 0x273   :  { %v697_v29 = vpop.eup %696  ;;  %v307_v30 = vmul.f32 0.5, %v695_v28 }
 0x274   :  { %v308_v31 = vmul.f32 0.5, %v697_v29 }
 0x275   :  { %v309_v32 = vadd.f32 0.5, %v307_v30 }
 0x276   :  { %v310_v33 = vadd.f32 0.5, %v308_v31 }
 0x277   :  { %v311_v34 = vmul.f32 0.5, %v309_v32 }
 0x278   :  { %v312_v35 = vmul.f32 0.5, %v310_v33 }
 0x279   :  { %698 = vtanh.f32 %v311_v34 }
 0x27a   :  { %700 = vtanh.f32 %v312_v35 }
 0x283   :  { %v699_v36 = vpop.eup %698 }
 0x284   :  { %v701_v37 = vpop.eup %700  ;;  %v315_v38 = vmul.f32 0.5, %v699_v36 }
 0x285   :  { %v316_v39 = vmul.f32 0.5, %v701_v37 }
 0x286   :  { %v317_v40 = vadd.f32 0.5, %v315_v38 }
 0x287   :  { %v318_v41 = vadd.f32 0.5, %v316_v39 }
 0x288   :  { %v319_v42 = vmul.f32 0.5, %v317_v40 }
 0x289   :  { %v320_v43 = vmul.f32 0.5, %v318_v41 }
 0x28a   :  { %702 = vtanh.f32 %v319_v42 }
 0x28b   :  { %704 = vtanh.f32 %v320_v43 }
 0x294   :  { %v703_v44 = vpop.eup %702 }
 0x295   :  { %v705_v45 = vpop.eup %704  ;;  %v323_v46 = vmul.f32 0.5, %v703_v44 }
 0x296   :  { %v324_v47 = vmul.f32 0.5, %v705_v45 }
 0x297   :  { %v325_v48 = vadd.f32 0.5, %v323_v46 }
 0x298   :  { %v326_v49 = vadd.f32 0.5, %v324_v47 }
 0x299   :  { %v327_v50 = vmul.f32 0.5, %v325_v48 }
 0x29a   :  { %v328_v51 = vmul.f32 0.5, %v326_v49 }
 0x29b   :  { %706 = vtanh.f32 %v327_v50 }
 0x29c   :  { %708 = vtanh.f32 %v328_v51 }
 0x2a5   :  { %v707_v52 = vpop.eup %706 }
 0x2a6   :  { %v709_v53 = vpop.eup %708  ;;  %v331_v54 = vmul.f32 0.5, %v707_v52 }
 0x2a7   :  { %v332_v55 = vmul.f32 0.5, %v709_v53 }
 0x2a8   :  { %v333_v56 = vadd.f32 0.5, %v331_v54 }
 0x2a9   :  { %v334_v57 = vadd.f32 0.5, %v332_v55 }
 0x2aa   :  { %v335_v58 = vmul.f32 0.5, %v333_v56 }
 0x2ab   :  { %v336_v59 = vmul.f32 0.5, %v334_v57 }
 0x2ac   :  { %710 = vtanh.f32 %v335_v58 }
 0x2ad   :  { %712 = vtanh.f32 %v336_v59 }
 0x2b6   :  { %v711_v60 = vpop.eup %710 }
 0x2b7   :  { %v713_v61 = vpop.eup %712  ;;  %v339_v62 = vmul.f32 0.5, %v711_v60 }
 0x2b8   :  { %v340_v63 = vmul.f32 0.5, %v713_v61 }
 0x2b9   :  { %v341_v0 = vadd.f32 0.5, %v339_v62 }
 0x2ba   :  { %v342_v1 = vadd.f32 0.5, %v340_v63 }
 0x2bb   :  { %v343_v2 = vmul.f32 0.5, %v341_v0 }
 0x2bc   :  { %v344_v3 = vmul.f32 0.5, %v342_v1 }
 0x2bd   :  { %714 = vtanh.f32 %v343_v2 }
 0x2be   :  { %716 = vtanh.f32 %v344_v3 }
 0x2c7   :  { %v715_v4 = vpop.eup %714 }
 0x2c8   :  { %v717_v5 = vpop.eup %716  ;;  %v347_v6 = vmul.f32 0.5, %v715_v4 }
 0x2c9   :  { %v348_v7 = vmul.f32 0.5, %v717_v5 }
 0x2ca   :  { %v349_v8 = vadd.f32 0.5, %v347_v6 }
 0x2cb   :  { %v350_v9 = vadd.f32 0.5, %v348_v7 }
 0x2cc   :  { %v351_v10 = vmul.f32 0.5, %v349_v8 }
 0x2cd   :  { %v352_v11 = vmul.f32 0.5, %v350_v9 }
 0x2ce   :  { %718 = vtanh.f32 %v351_v10 }
 0x2cf   :  { %720 = vtanh.f32 %v352_v11 }
 0x2d8   :  { %v719_v12 = vpop.eup %718 }
 0x2d9   :  { %v721_v13 = vpop.eup %720  ;;  %v355_v14 = vmul.f32 0.5, %v719_v12 }
 0x2da   :  { %v356_v15 = vmul.f32 0.5, %v721_v13 }
 0x2db   :  { %v357_v16 = vadd.f32 0.5, %v355_v14 }
 0x2dc   :  { %v358_v17 = vadd.f32 0.5, %v356_v15 }
 0x2dd   :  { %v359_v18 = vmul.f32 0.5, %v357_v16 }
 0x2de   :  { %v360_v19 = vmul.f32 0.5, %v358_v17 }
 0x2df   :  { %722 = vtanh.f32 %v359_v18 }
 0x2e0   :  { %724 = vtanh.f32 %v360_v19 }
 0x2e9   :  { %v723_v20 = vpop.eup %722 }
 0x2ea   :  { %v725_v21 = vpop.eup %724  ;;  %v363_v22 = vmul.f32 0.5, %v723_v20 }
 0x2eb   :  { %v364_v23 = vmul.f32 0.5, %v725_v21 }
 0x2ec   :  { %v365_v24 = vadd.f32 0.5, %v363_v22 }
 0x2ed   :  { %v366_v25 = vadd.f32 0.5, %v364_v23 }
 0x2ee   :  { %v367_v26 = vmul.f32 0.5, %v365_v24 }
 0x2ef   :  { %v368_v27 = vmul.f32 0.5, %v366_v25 }
 0x2f0   :  { %726 = vtanh.f32 %v367_v26 }
 0x2f1   :  { %728 = vtanh.f32 %v368_v27 }
 0x2fa   :  { %v727_v28 = vpop.eup %726 }
 0x2fb   :  { %v729_v29 = vpop.eup %728  ;;  %v371_v30 = vmul.f32 0.5, %v727_v28 }
 0x2fc   :  { %v372_v31 = vmul.f32 0.5, %v729_v29 }
 0x2fd   :  { %v373_v32 = vadd.f32 0.5, %v371_v30 }
 0x2fe   :  { %v374_v33 = vadd.f32 0.5, %v372_v31 }
 0x2ff   :  { %v375_v34 = vmul.f32 0.5, %v373_v32 }
 0x300   :  { %v376_v35 = vmul.f32 0.5, %v374_v33 }
 0x301   :  { %730 = vtanh.f32 %v375_v34 }
 0x302   :  { %732 = vtanh.f32 %v376_v35 }
 0x30b   :  { %v731_v36 = vpop.eup %730 }
 0x30c   :  { %v733_v37 = vpop.eup %732  ;;  %v379_v38 = vmul.f32 0.5, %v731_v36 }
 0x30d   :  { %v380_v39 = vmul.f32 0.5, %v733_v37 }
 0x30e   :  { %v381_v40 = vadd.f32 0.5, %v379_v38 }
 0x30f   :  { %v382_v41 = vadd.f32 0.5, %v380_v39 }
 0x310   :  { %v383_v42 = vmul.f32 0.5, %v381_v40 }
 0x311   :  { %v384_v43 = vmul.f32 0.5, %v382_v41 }
 0x312   :  { %734 = vtanh.f32 %v383_v42 }
 0x313   :  { %736 = vtanh.f32 %v384_v43 }
 0x31c   :  { %v735_v44 = vpop.eup %734 }
 0x31d   :  { %v737_v45 = vpop.eup %736  ;;  %v387_v46 = vmul.f32 0.5, %v735_v44 }
 0x31e   :  { %v388_v47 = vmul.f32 0.5, %v737_v45 }
 0x31f   :  { %v389_v48 = vadd.f32 0.5, %v387_v46 }
 0x320   :  { %v390_v49 = vadd.f32 0.5, %v388_v47 }
 0x321   :  { %v391_v50 = vmul.f32 0.5, %v389_v48 }
 0x322   :  { %v392_v51 = vmul.f32 0.5, %v390_v49 }
 0x323   :  { %738 = vtanh.f32 %v391_v50 }
 0x324   :  { %740 = vtanh.f32 %v392_v51 }
 0x32d   :  { %v739_v52 = vpop.eup %738 }
 0x32e   :  { %v741_v53 = vpop.eup %740  ;;  %v395_v54 = vmul.f32 0.5, %v739_v52 }
 0x32f   :  { %v396_v55 = vmul.f32 0.5, %v741_v53 }
 0x330   :  { %v397_v56 = vadd.f32 0.5, %v395_v54 }
 0x331   :  { %v398_v57 = vadd.f32 0.5, %v396_v55 }
 0x332   :  { %v399_v58 = vmul.f32 0.5, %v397_v56 }
 0x333   :  { %v400_v59 = vmul.f32 0.5, %v398_v57 }
 0x334   :  { %742 = vtanh.f32 %v399_v58 }
 0x335   :  { %744 = vtanh.f32 %v400_v59 }
 0x33e   :  { %v743_v60 = vpop.eup %742 }
 0x33f   :  { %v745_v61 = vpop.eup %744  ;;  %v403_v62 = vmul.f32 0.5, %v743_v60 }
 0x340   :  { %v404_v63 = vmul.f32 0.5, %v745_v61 }
 0x341   :  { %v405_v0 = vadd.f32 0.5, %v403_v62 }
 0x342   :  { %v406_v1 = vadd.f32 0.5, %v404_v63 }
 0x343   :  { %v407_v2 = vmul.f32 0.5, %v405_v0 }
 0x344   :  { %v408_v3 = vmul.f32 0.5, %v406_v1 }
 0x345   :  { %746 = vtanh.f32 %v407_v2 }
 0x346   :  { %748 = vtanh.f32 %v408_v3 }
 0x34f   :  { %v747_v4 = vpop.eup %746 }
 0x350   :  { %v749_v5 = vpop.eup %748  ;;  %v411_v6 = vmul.f32 0.5, %v747_v4 }
 0x351   :  { %v412_v7 = vmul.f32 0.5, %v749_v5 }
 0x352   :  { %v413_v8 = vadd.f32 0.5, %v411_v6 }
 0x353   :  { %v414_v9 = vadd.f32 0.5, %v412_v7 }
 0x354   :  { %v415_v10 = vmul.f32 0.5, %v413_v8 }
 0x355   :  { %v416_v11 = vmul.f32 0.5, %v414_v9 }
 0x356   :  { %750 = vtanh.f32 %v415_v10 }
 0x357   :  { %752 = vtanh.f32 %v416_v11 }
 0x360   :  { %v751_v12 = vpop.eup %750 }
 0x361   :  { %v753_v13 = vpop.eup %752  ;;  %v419_v14 = vmul.f32 0.5, %v751_v12 }
 0x362   :  { %v420_v15 = vmul.f32 0.5, %v753_v13 }
 0x363   :  { %v421_v16 = vadd.f32 0.5, %v419_v14 }
 0x364   :  { %v422_v17 = vadd.f32 0.5, %v420_v15 }
 0x365   :  { %v423_v18 = vmul.f32 0.5, %v421_v16 }
 0x366   :  { %v424_v19 = vmul.f32 0.5, %v422_v17 }
 0x367   :  { %754 = vtanh.f32 %v423_v18 }
 0x368   :  { %756 = vtanh.f32 %v424_v19 }
 0x371   :  { %v755_v20 = vpop.eup %754 }
 0x372   :  { %v757_v21 = vpop.eup %756  ;;  %v427_v22 = vmul.f32 0.5, %v755_v20 }
 0x373   :  { %v428_v23 = vmul.f32 0.5, %v757_v21 }
 0x374   :  { %v429_v24 = vadd.f32 0.5, %v427_v22 }
 0x375   :  { %v430_v25 = vadd.f32 0.5, %v428_v23 }
 0x376   :  { %v431_v26 = vmul.f32 0.5, %v429_v24 }
 0x377   :  { %v432_v27 = vmul.f32 0.5, %v430_v25 }
 0x378   :  { %758 = vtanh.f32 %v431_v26 }
 0x379   :  { %760 = vtanh.f32 %v432_v27 }
 0x382   :  { %v759_v28 = vpop.eup %758 }
 0x383   :  { %v761_v29 = vpop.eup %760  ;;  %v435_v30 = vmul.f32 0.5, %v759_v28 }
 0x384   :  { %v436_v31 = vmul.f32 0.5, %v761_v29 }
 0x385   :  { %v437_v32 = vadd.f32 0.5, %v435_v30 }
 0x386   :  { %v438_v33 = vadd.f32 0.5, %v436_v31 }
 0x387   :  { %v439_v34 = vmul.f32 0.5, %v437_v32 }
 0x388   :  { %v440_v35 = vmul.f32 0.5, %v438_v33 }
 0x389   :  { %762 = vtanh.f32 %v439_v34 }
 0x38a   :  { %764 = vtanh.f32 %v440_v35 }
 0x393   :  { %v763_v36 = vpop.eup %762 }
 0x394   :  { %v765_v37 = vpop.eup %764  ;;  %v443_v38 = vmul.f32 0.5, %v763_v36 }
 0x395   :  { %v444_v39 = vmul.f32 0.5, %v765_v37 }
 0x396   :  { %v445_v40 = vadd.f32 0.5, %v443_v38 }
 0x397   :  { %v446_v41 = vadd.f32 0.5, %v444_v39 }
 0x398   :  { %v447_v42 = vmul.f32 0.5, %v445_v40 }
 0x399   :  { %v448_v43 = vmul.f32 0.5, %v446_v41 }
 0x39a   :  { %766 = vtanh.f32 %v447_v42 }
 0x39b   :  { %768 = vtanh.f32 %v448_v43 }
 0x3a4   :  { %v767_v44 = vpop.eup %766 }
 0x3a5   :  { %v769_v45 = vpop.eup %768  ;;  %v451_v46 = vmul.f32 0.5, %v767_v44 }
 0x3a6   :  { %v452_v47 = vmul.f32 0.5, %v769_v45 }
 0x3a7   :  { %v453_v48 = vadd.f32 0.5, %v451_v46 }
 0x3a8   :  { %v454_v49 = vadd.f32 0.5, %v452_v47 }
 0x3a9   :  { %v455_v50 = vmul.f32 0.5, %v453_v48 }
 0x3aa   :  { %v456_v51 = vmul.f32 0.5, %v454_v49 }
 0x3ab   :  { %770 = vtanh.f32 %v455_v50 }
 0x3ac   :  { %772 = vtanh.f32 %v456_v51 }
 0x3b5   :  { %v771_v52 = vpop.eup %770 }
 0x3b6   :  { %v773_v53 = vpop.eup %772  ;;  %v459_v54 = vmul.f32 0.5, %v771_v52 }
 0x3b7   :  { %v460_v55 = vmul.f32 0.5, %v773_v53 }
 0x3b8   :  { %v461_v56 = vadd.f32 0.5, %v459_v54 }
 0x3b9   :  { %v462_v57 = vadd.f32 0.5, %v460_v55 }
 0x3ba   :  { %v463_v58 = vmul.f32 0.5, %v461_v56 }
 0x3bb   :  { %v464_v59 = vmul.f32 0.5, %v462_v57 }
 0x3bc   :  { %774 = vtanh.f32 %v463_v58 }
 0x3bd   :  { %776 = vtanh.f32 %v464_v59 }
 0x3c6   :  { %v775_v60 = vpop.eup %774 }
 0x3c7   :  { %v777_v61 = vpop.eup %776  ;;  %v467_v62 = vmul.f32 0.5, %v775_v60 }
 0x3c8   :  { %v468_v63 = vmul.f32 0.5, %v777_v61 }
 0x3c9   :  { %v469_v0 = vadd.f32 0.5, %v467_v62 }
 0x3ca   :  { %v470_v1 = vadd.f32 0.5, %v468_v63 }
 0x3cb   :  { %v471_v2 = vmul.f32 0.5, %v469_v0 }
 0x3cc   :  { %v472_v3 = vmul.f32 0.5, %v470_v1 }
 0x3cd   :  { %778 = vtanh.f32 %v471_v2 }
 0x3ce   :  { %780 = vtanh.f32 %v472_v3 }
 0x3d7   :  { %v779_v4 = vpop.eup %778 }
 0x3d8   :  { %v781_v5 = vpop.eup %780  ;;  %v475_v6 = vmul.f32 0.5, %v779_v4 }
 0x3d9   :  { %v476_v7 = vmul.f32 0.5, %v781_v5 }
 0x3da   :  { %v477_v8 = vadd.f32 0.5, %v475_v6 }
 0x3db   :  { %v478_v9 = vadd.f32 0.5, %v476_v7 }
 0x3dc   :  { %v479_v10 = vmul.f32 0.5, %v477_v8 }
 0x3dd   :  { %v480_v11 = vmul.f32 0.5, %v478_v9 }
 0x3de   :  { %782 = vtanh.f32 %v479_v10 }
 0x3df   :  { %784 = vtanh.f32 %v480_v11 }
 0x3e8   :  { %v783_v12 = vpop.eup %782 }
 0x3e9   :  { %v785_v13 = vpop.eup %784  ;;  %v483_v14 = vmul.f32 0.5, %v783_v12 }
 0x3ea   :  { %v484_v15 = vmul.f32 0.5, %v785_v13 }
 0x3eb   :  { %v485_v16 = vadd.f32 0.5, %v483_v14 }
 0x3ec   :  { %v486_v17 = vadd.f32 0.5, %v484_v15 }
 0x3ed   :  { %v487_v18 = vmul.f32 0.5, %v485_v16 }
 0x3ee   :  { %v488_v19 = vmul.f32 0.5, %v486_v17 }
 0x3ef   :  { %786 = vtanh.f32 %v487_v18 }
 0x3f0   :  { %788 = vtanh.f32 %v488_v19 }
 0x3f9   :  { %v787_v20 = vpop.eup %786 }
 0x3fa   :  { %v789_v21 = vpop.eup %788  ;;  %v491_v22 = vmul.f32 0.5, %v787_v20 }
 0x3fb   :  { %v492_v23 = vmul.f32 0.5, %v789_v21 }
 0x3fc   :  { %v493_v24 = vadd.f32 0.5, %v491_v22 }
 0x3fd   :  { %v494_v25 = vadd.f32 0.5, %v492_v23 }
 0x3fe   :  { %v495_v26 = vmul.f32 0.5, %v493_v24 }
 0x3ff   :  { %v496_v27 = vmul.f32 0.5, %v494_v25 }
 0x400   :  { %790 = vtanh.f32 %v495_v26 }
 0x401   :  { %792 = vtanh.f32 %v496_v27 }
 0x40a   :  { %v791_v28 = vpop.eup %790 }
 0x40b   :  { %v793_v29 = vpop.eup %792  ;;  %v499_v30 = vmul.f32 0.5, %v791_v28 }
 0x40c   :  { %v500_v31 = vmul.f32 0.5, %v793_v29 }
 0x40d   :  { %v501_v32 = vadd.f32 0.5, %v499_v30 }
 0x40e   :  { %v502_v33 = vadd.f32 0.5, %v500_v31 }
 0x40f   :  { %v503_v34 = vmul.f32 0.5, %v501_v32 }
 0x410   :  { %v504_v35 = vmul.f32 0.5, %v502_v33 }
 0x411   :  { %794 = vtanh.f32 %v503_v34 }
 0x412   :  { %796 = vtanh.f32 %v504_v35 }
 0x41b   :  { %v795_v36 = vpop.eup %794 }
 0x41c   :  { %v797_v37 = vpop.eup %796  ;;  %v507_v38 = vmul.f32 0.5, %v795_v36 }
 0x41d   :  { %v508_v39 = vmul.f32 0.5, %v797_v37 }
 0x41e   :  { %v509_v40 = vadd.f32 0.5, %v507_v38 }
 0x41f   :  { %v510_v41 = vadd.f32 0.5, %v508_v39 }
 0x420   :  { %v511_v42 = vmul.f32 0.5, %v509_v40 }
 0x421   :  { %v512_v43 = vmul.f32 0.5, %v510_v41 }
 0x422   :  { %798 = vtanh.f32 %v511_v42 }
 0x423   :  { %800 = vtanh.f32 %v512_v43 }
 0x42c   :  { %v799_v44 = vpop.eup %798 }
 0x42d   :  { %v801_v45 = vpop.eup %800  ;;  %v515_v46 = vmul.f32 0.5, %v799_v44 }
 0x42e   :  { %v516_v47 = vmul.f32 0.5, %v801_v45 }
 0x42f   :  { %v517_v48 = vadd.f32 0.5, %v515_v46 }
 0x430   :  { %v518_v49 = vadd.f32 0.5, %v516_v47 }
 0x431   :  { %v519_v50 = vmul.f32 0.5, %v517_v48 }
 0x432   :  { %v520_v51 = vmul.f32 0.5, %v518_v49 }
 0x433   :  { %802 = vtanh.f32 %v519_v50 }
 0x434   :  { %804 = vtanh.f32 %v520_v51 }
 0x43d   :  { %v803_v52 = vpop.eup %802 }
 0x43e   :  { %v805_v53 = vpop.eup %804  ;;  %v523_v54 = vmul.f32 0.5, %v803_v52 }
 0x43f   :  { %v524_v55 = vmul.f32 0.5, %v805_v53 }
 0x440   :  { %v525_v56 = vadd.f32 0.5, %v523_v54 }
 0x441   :  { %v526_v57 = vadd.f32 0.5, %v524_v55 }
 0x442   :  { %v527_v58 = vmul.f32 0.5, %v525_v56 }
 0x443   :  { %v528_v59 = vmul.f32 0.5, %v526_v57 }
 0x444   :  { %806 = vtanh.f32 %v527_v58 }
 0x445   :  { %808 = vtanh.f32 %v528_v59 }
 0x44e   :  { %v807_v60 = vpop.eup %806 }
 0x44f   :  { %v809_v61 = vpop.eup %808  ;;  %v531_v62 = vmul.f32 0.5, %v807_v60 }
 0x450   :  { %v532_v63 = vmul.f32 0.5, %v809_v61 }
 0x451   :  { %v533_v0 = vadd.f32 0.5, %v531_v62 }
 0x452   :  { %v534_v1 = vadd.f32 0.5, %v532_v63 }
 0x453   :  { %535 = vst [vmem:[#allocation5] sm:$0xff] %v533_v0 }
 0x454   :  { %536 = vst [vmem:[#allocation5 + $0x8] sm:$0xff] %v534_v1 }
 0x455   :  { %843 = shalt.err (!%p840_p12)
}
 0x456   :  { %s844_s22 = scalar_lea.hbm %s895_s1, 256 }
 0x457   :  { %p845_p13 = scmp.ne.s32.totalorder %s895_s1, %s844_s22  ;;  %p848_p0 = scmp.lt.u32.totalorder %s844_s22, %s895_s1 }
 0x459   :  { %p850_p1 = pnand %p848_p0, %p845_p13 }
 0x45b   :  { %853 = shalt.err (!%p850_p1)
}
 0x45c   :  { %546 = dma.vmem_to_hbm [thread:$0]  %s544_s18, 256, %s895_s1, [#allocation4]  }
 0x45d   :  { %856 = dma.done.wait [#allocation4], 256  }
 0x45e   :  { %857 = vsyncadd [#allocation4], 4294967040 }
 0x45f   :  { %550 = vsyncpa [#allocation3], 1 }
 0x460   :  { %551 = vsyncpa [#allocation4], 1 }

</bundles_post_ra>
